<compile_context>
chip_gen: v7x
topology: tpu7x:2x2x1
jax: 0.10.0
libtpu: 0.0.40
codegen_flags: <defaults>
</compile_context>

<pallas_src>
import math
import functools

import jax
import jax.numpy as jnp
from jax.experimental import pallas as pl
from jax.experimental.pallas import tpu as pltpu


def make_mlp_kernel(num_layers: int,
                    use_layer_norm: bool,
                    residual: bool,
                    alpha: float,
                    keep_last_act: bool,
                    eps: float = 1e-9,
                    matmul_dtype=jnp.float32):
    """Builds the fused MLP kernel.

    Ref layout:
      refs[0]         : x tile                      (TN, in_dim)
      refs[1 : 1+L]   : W_i                         (dim_in_i, width_i)
                        (last W may be zero-padded to a lane-dense width)
      refs[1+L]       : packed param slab           (P, VW)
                          rows [0, L)        -> biases
                          rows [L, L+A)      -> LN gammas  (A = #activated layers)
                          rows [L+A, L+2A)   -> LN betas
      refs[2+L]       : out tile                    (TN, width_{L-1})
    """
    L = num_layers
    n_act = L if keep_last_act else L - 1

    def kernel(x_ref, *refs):
        w_refs = refs[:L]
        vec_ref = refs[L]
        out_ref = refs[L + 1]

        x = x_ref[...].astype(jnp.float32)
        x_0 = None
        x_pre = None

        for i in range(L):
            d = w_refs[i].shape[1]
            # Linear: one MXU matmul per layer on the resident row tile.
            x = jnp.dot(x.astype(matmul_dtype),
                        w_refs[i][...].astype(matmul_dtype),
                        preferred_element_type=jnp.float32)
            x = x + vec_ref[i:i + 1, :d]                       # bias

            if i < n_act:
                if use_layer_norm:
                    mu = jnp.mean(x, axis=-1, keepdims=True)
                    var = jnp.mean((x - mu) * (x - mu), axis=-1, keepdims=True)
                    x = (x - mu) * jax.lax.rsqrt(var + eps)
                    x = (x * vec_ref[L + i:L + i + 1, :d]
                         + vec_ref[L + n_act + i:L + n_act + i + 1, :d])
                if residual:
                    if x_pre is not None:
                        x = x + x_pre
                    x_pre = x
                x = jnp.maximum(x, 0.0)                         # act = relu
                # dropout: eval-mode identity (see TODO at top)
                if x_0 is not None and alpha > 0.0:
                    x = (1.0 - alpha) * x + alpha * x_0
                else:
                    x_0 = x

        out_ref[...] = x.astype(out_ref.dtype)

    return kernel


def base_mlp_forward(x, weights, biases, gammas=None, betas=None, *,
                     norm=None, residual=False, alpha=0.0,
                     keep_last_act=False, act='relu', dropout=0.0,
                     block_rows=512, matmul_dtype=jnp.float32):
    """Pallas forward for BaseMLP (eval mode).

    x:       (N, in_channels) f32
    weights: list of (dim_in_i, dim_out_i) f32   (already transposed vs torch)
    biases:  list of (1, dim_out_i) f32
    gammas/betas: lists of (1, dim_out_i) f32 LayerNorm params (if norm=='layer')
    """
    assert act == 'relu', "only relu implemented"
    assert norm in (None, 'layer'), "norm='batch' (BatchNorm1d) not implemented"
    # dropout: F.dropout in eval mode is identity for any p -> nothing to do.

    L = len(weights)
    use_ln = (norm == 'layer')
    n_act = L if keep_last_act else L - 1

    N, in_dim = x.shape
    dims_out = [int(w.shape[1]) for w in weights]
    out_dim = dims_out[-1]

    # ---- lane-dense output: pad the final Linear's columns to a multiple of
    # 128 so every output store is a full-lane unmasked vst.  Safe only when
    # the last layer is a pure Linear (padded cols are exact zeros).
    lane_dense = (not keep_last_act) and (out_dim % 128 != 0)
    out_w = ((out_dim + 127) // 128) * 128 if lane_dense else out_dim
    w_last = weights[-1]
    b_last = jnp.asarray(biases[-1], jnp.float32).reshape(1, -1)
    if lane_dense:
        w_last = jnp.pad(w_last, ((0, 0), (0, out_w - out_dim)))
        b_last = jnp.pad(b_last, ((0, 0), (0, out_w - out_dim)))
    kernel_weights = list(weights[:-1]) + [w_last]
    widths = dims_out[:-1] + [out_w]

    # ---- pack all (1, dim) parameter vectors into a single (P, VW) slab:
    # one resident VMEM tile / one DMA descriptor instead of many tiny arrays.
    VW = ((max(widths) + 127) // 128) * 128

    def _row(v):
        v = jnp.asarray(v, jnp.float32).reshape(1, -1)
        return jnp.pad(v, ((0, 0), (0, VW - v.shape[1])))

    rows = [_row(b) for b in biases[:-1]] + [_row(b_last)]
    if use_ln:
        rows += [_row(g) for g in gammas[:n_act]]
        rows += [_row(bt) for bt in betas[:n_act]]
    n_rows = len(rows)
    P = ((n_rows + 7) // 8) * 8
    if P != n_rows:
        rows.append(jnp.zeros((P - n_rows, VW), jnp.float32))
    vec_slab = jnp.concatenate(rows, axis=0)

    # ---- row tiling: big tiles (per-step overhead dominates here); no host
    # padding -- ragged last block is handled by Pallas (out-of-range output
    # rows are masked on writeback, and rows are independent).
    TN = max(8, (min(block_rows, N) // 8) * 8)     # sublane-aligned row tile
    n_blocks = pl.cdiv(N, TN)

    in_specs = [pl.BlockSpec((TN, in_dim), lambda n: (n, 0))]
    args = [x]
    for w in kernel_weights:                        # weights stay VMEM-resident
        in_specs.append(pl.BlockSpec(w.shape, lambda n: (0, 0)))
        args.append(w)
    in_specs.append(pl.BlockSpec(vec_slab.shape, lambda n: (0, 0)))
    args.append(vec_slab)

    kernel = make_mlp_kernel(L, use_ln, residual, alpha, keep_last_act,
                             matmul_dtype=matmul_dtype)

    out = pl.pallas_call(
        kernel,
        out_shape=jax.ShapeDtypeStruct((N, out_w), x.dtype),
        grid=(n_blocks,),
        in_specs=in_specs,
        out_specs=pl.BlockSpec((TN, out_w), lambda n: (n, 0)),
        compiler_params=pltpu.CompilerParams(
            dimension_semantics=("parallel",)),
    )(*args)

    return out[:, :out_dim] if lane_dense else out


def reference(x, weights, biases, gammas, betas, *,
              norm=None, residual=False, alpha=0.0,
              keep_last_act=False, eps=1e-9):
    """Pure-JAX reference mirroring BaseMLP.forward (eval mode)."""
    L = len(weights)
    x_0 = x_pre = None
    for i in range(L):
        x = x @ weights[i] + biases[i]
        if i < L - 1 or keep_last_act:
            if norm == 'layer':
                mu = jnp.mean(x, axis=-1, keepdims=True)
                var = jnp.mean((x - mu) ** 2, axis=-1, keepdims=True)
                x = (x - mu) / jnp.sqrt(var + eps) * gammas[i] + betas[i]
            if residual:
                if x_pre is not None:
                    x = x + x_pre
                x_pre = x
            x = jax.nn.relu(x)
            if x_0 is not None and alpha > 0.0:
                x = (1.0 - alpha) * x + alpha * x_0
            else:
                x_0 = x
    return x


if __name__ == "__main__":
    # --- module config ---
    in_channels = 16
    hidden_channels = 32
    out_channels = 32
    num_layers = 3
    norm = 'layer'
    residual = True
    incep_alpha = 0.25
    keep_last_act = False
    dropout = 0.0
    N = 256

    # layer dims
    dims_in = [in_channels] + [hidden_channels] * (num_layers - 1)
    dims_out = [hidden_channels] * (num_layers - 1) + [out_channels]

    # --- deterministic parameter init (torch Linear-style uniform bounds) ---
    key = jax.random.PRNGKey(0)
    keys = jax.random.split(key, 2 * num_layers + 1)
    weights, biases = [], []
    for i in range(num_layers):
        bound = 1.0 / math.sqrt(dims_in[i])
        weights.append(jax.random.uniform(
            keys[2 * i], (dims_in[i], dims_out[i]),
            minval=-bound, maxval=bound, dtype=jnp.float32))
        biases.append(jax.random.uniform(
            keys[2 * i + 1], (1, dims_out[i]),
            minval=-bound, maxval=bound, dtype=jnp.float32))
    # LayerNorm reset_parameters -> ones / zeros
    gammas = [jnp.ones((1, d), jnp.float32) for d in dims_out]
    betas = [jnp.zeros((1, d), jnp.float32) for d in dims_out]

    # --- example input ---
    x = jax.random.normal(keys[-1], (N, in_channels), dtype=jnp.float32)

    fn = functools.partial(base_mlp_forward,
                           norm=norm, residual=residual, alpha=incep_alpha,
                           keep_last_act=keep_last_act, dropout=dropout,
                           block_rows=512)          # 1 grid step at N=256
    y = fn(x, weights, biases, gammas, betas)
    jax.block_until_ready(y)

    y_ref = reference(x, weights, biases, gammas, betas,
                      norm=norm, residual=residual, alpha=incep_alpha,
                      keep_last_act=keep_last_act)

    assert y.shape == (N, out_channels)
    assert jnp.allclose(y, y_ref, rtol=1e-5, atol=1e-5), (
        float(jnp.max(jnp.abs(y - y_ref))))

    print("KERNEL_OK")
</pallas_src>

<mosaic_0001>
module attributes {stable_mosaic.version = 11 : i64} {
  func.func @kernel(%arg0: i32, %arg1: memref<256x16xf32, #tpu.memory_space<vmem>>, %arg2: memref<16x32xf32, #tpu.memory_space<vmem>>, %arg3: memref<32x32xf32, #tpu.memory_space<vmem>>, %arg4: memref<32x128xf32, #tpu.memory_space<vmem>>, %arg5: memref<8x128xf32, #tpu.memory_space<vmem>>, %arg6: memref<256x128xf32, #tpu.memory_space<vmem>>) attributes {dimension_semantics = [#tpu.dimension_semantics<parallel>], iteration_bounds = array<i64: 1>, scalar_prefetch = 0 : i64, scratch_operands = 0 : i64, tpu.core_type = #tpu.core_type<tc>, window_params = [{transform_indices = @transform_0, window_bounds = array<i64: 256, 16>}, {pipeline_mode = #tpu.pipeline_mode<synchronous>, transform_indices = @transform_1, window_bounds = array<i64: 16, 32>}, {pipeline_mode = #tpu.pipeline_mode<synchronous>, transform_indices = @transform_2, window_bounds = array<i64: 32, 32>}, {pipeline_mode = #tpu.pipeline_mode<synchronous>, transform_indices = @transform_3, window_bounds = array<i64: 32, 128>}, {pipeline_mode = #tpu.pipeline_mode<synchronous>, transform_indices = @transform_4, window_bounds = array<i64: 8, 128>}, {transform_indices = @transform_5, window_bounds = array<i64: 256, 128>}]} {
    %c0 = arith.constant 0 : index
    %c0_0 = arith.constant 0 : index
    %0 = vector.load %arg1[%c0, %c0_0] : memref<256x16xf32, #tpu.memory_space<vmem>>, vector<256x16xf32>
    %c0_1 = arith.constant 0 : index
    %c0_2 = arith.constant 0 : index
    %1 = vector.load %arg2[%c0_1, %c0_2] : memref<16x32xf32, #tpu.memory_space<vmem>>, vector<16x32xf32>
    %cst = arith.constant dense<0.000000e+00> : vector<256x32xf32>
    %2 = tpu.matmul %0, %1, %cst {dimension_numbers = #tpu.dot_dimension_numbers<[1], [0], [0], [1], [0, 0, 1, 1], [], []>} : vector<256x16xf32>, vector<16x32xf32>, vector<256x32xf32> -> vector<256x32xf32>
    %c0_3 = arith.constant 0 : index
    %c0_4 = arith.constant 0 : index
    %3 = vector.load %arg5[%c0_3, %c0_4] : memref<8x128xf32, #tpu.memory_space<vmem>>, vector<1x32xf32>
    %4 = vector.broadcast %3 : vector<1x32xf32> to vector<256x32xf32>
    %5 = arith.addf %2, %4 : vector<256x32xf32>
    %cst_5 = arith.constant dense<0.000000e+00> : vector<256xf32>
    %6 = vector.multi_reduction <add>, %5, %cst_5 [1] : vector<256x32xf32> to vector<256xf32>
    %7 = vector.shape_cast %6 : vector<256xf32> to vector<256x1xf32>
    %cst_6 = arith.constant 3.200000e+01 : f32
    %8 = vector.broadcast %cst_6 : f32 to vector<256x1xf32>
    %9 = arith.divf %7, %8 : vector<256x1xf32>
    %10 = vector.broadcast %9 : vector<256x1xf32> to vector<256x32xf32>
    %11 = arith.subf %5, %10 : vector<256x32xf32>
    %12 = vector.broadcast %9 : vector<256x1xf32> to vector<256x32xf32>
    %13 = arith.subf %5, %12 : vector<256x32xf32>
    %14 = arith.mulf %11, %13 : vector<256x32xf32>
    %cst_7 = arith.constant dense<0.000000e+00> : vector<256xf32>
    %15 = vector.multi_reduction <add>, %14, %cst_7 [1] : vector<256x32xf32> to vector<256xf32>
    %16 = vector.shape_cast %15 : vector<256xf32> to vector<256x1xf32>
    %cst_8 = arith.constant 3.200000e+01 : f32
    %17 = vector.broadcast %cst_8 : f32 to vector<256x1xf32>
    %18 = arith.divf %16, %17 : vector<256x1xf32>
    %19 = vector.broadcast %9 : vector<256x1xf32> to vector<256x32xf32>
    %20 = arith.subf %5, %19 : vector<256x32xf32>
    %cst_9 = arith.constant 9.99999971E-10 : f32
    %21 = vector.broadcast %cst_9 : f32 to vector<256x1xf32>
    %22 = arith.addf %18, %21 : vector<256x1xf32>
    %23 = math.rsqrt %22 : vector<256x1xf32>
    %24 = vector.broadcast %23 : vector<256x1xf32> to vector<256x32xf32>
    %25 = arith.mulf %20, %24 : vector<256x32xf32>
    %c3 = arith.constant 3 : index
    %c0_10 = arith.constant 0 : index
    %26 = vector.load %arg5[%c3, %c0_10] : memref<8x128xf32, #tpu.memory_space<vmem>>, vector<1x32xf32>
    %27 = vector.broadcast %26 : vector<1x32xf32> to vector<256x32xf32>
    %28 = arith.mulf %25, %27 : vector<256x32xf32>
    %c5 = arith.constant 5 : index
    %c0_11 = arith.constant 0 : index
    %29 = vector.load %arg5[%c5, %c0_11] : memref<8x128xf32, #tpu.memory_space<vmem>>, vector<1x32xf32>
    %30 = vector.broadcast %29 : vector<1x32xf32> to vector<256x32xf32>
    %31 = arith.addf %28, %30 : vector<256x32xf32>
    %cst_12 = arith.constant 0.000000e+00 : f32
    %32 = vector.broadcast %cst_12 : f32 to vector<256x32xf32>
    %33 = arith.maximumf %31, %32 : vector<256x32xf32>
    %c0_13 = arith.constant 0 : index
    %c0_14 = arith.constant 0 : index
    %34 = vector.load %arg3[%c0_13, %c0_14] : memref<32x32xf32, #tpu.memory_space<vmem>>, vector<32x32xf32>
    %cst_15 = arith.constant dense<0.000000e+00> : vector<256x32xf32>
    %35 = tpu.matmul %33, %34, %cst_15 {dimension_numbers = #tpu.dot_dimension_numbers<[1], [0], [0], [1], [0, 0, 1, 1], [], []>} : vector<256x32xf32>, vector<32x32xf32>, vector<256x32xf32> -> vector<256x32xf32>
    %c1 = arith.constant 1 : index
    %c0_16 = arith.constant 0 : index
    %36 = vector.load %arg5[%c1, %c0_16] : memref<8x128xf32, #tpu.memory_space<vmem>>, vector<1x32xf32>
    %37 = vector.broadcast %36 : vector<1x32xf32> to vector<256x32xf32>
    %38 = arith.addf %35, %37 : vector<256x32xf32>
    %cst_17 = arith.constant dense<0.000000e+00> : vector<256xf32>
    %39 = vector.multi_reduction <add>, %38, %cst_17 [1] : vector<256x32xf32> to vector<256xf32>
    %40 = vector.shape_cast %39 : vector<256xf32> to vector<256x1xf32>
    %cst_18 = arith.constant 3.200000e+01 : f32
    %41 = vector.broadcast %cst_18 : f32 to vector<256x1xf32>
    %42 = arith.divf %40, %41 : vector<256x1xf32>
    %43 = vector.broadcast %42 : vector<256x1xf32> to vector<256x32xf32>
    %44 = arith.subf %38, %43 : vector<256x32xf32>
    %45 = vector.broadcast %42 : vector<256x1xf32> to vector<256x32xf32>
    %46 = arith.subf %38, %45 : vector<256x32xf32>
    %47 = arith.mulf %44, %46 : vector<256x32xf32>
    %cst_19 = arith.constant dense<0.000000e+00> : vector<256xf32>
    %48 = vector.multi_reduction <add>, %47, %cst_19 [1] : vector<256x32xf32> to vector<256xf32>
    %49 = vector.shape_cast %48 : vector<256xf32> to vector<256x1xf32>
    %cst_20 = arith.constant 3.200000e+01 : f32
    %50 = vector.broadcast %cst_20 : f32 to vector<256x1xf32>
    %51 = arith.divf %49, %50 : vector<256x1xf32>
    %52 = vector.broadcast %42 : vector<256x1xf32> to vector<256x32xf32>
    %53 = arith.subf %38, %52 : vector<256x32xf32>
    %cst_21 = arith.constant 9.99999971E-10 : f32
    %54 = vector.broadcast %cst_21 : f32 to vector<256x1xf32>
    %55 = arith.addf %51, %54 : vector<256x1xf32>
    %56 = math.rsqrt %55 : vector<256x1xf32>
    %57 = vector.broadcast %56 : vector<256x1xf32> to vector<256x32xf32>
    %58 = arith.mulf %53, %57 : vector<256x32xf32>
    %c4 = arith.constant 4 : index
    %c0_22 = arith.constant 0 : index
    %59 = vector.load %arg5[%c4, %c0_22] : memref<8x128xf32, #tpu.memory_space<vmem>>, vector<1x32xf32>
    %60 = vector.broadcast %59 : vector<1x32xf32> to vector<256x32xf32>
    %61 = arith.mulf %58, %60 : vector<256x32xf32>
    %c6 = arith.constant 6 : index
    %c0_23 = arith.constant 0 : index
    %62 = vector.load %arg5[%c6, %c0_23] : memref<8x128xf32, #tpu.memory_space<vmem>>, vector<1x32xf32>
    %63 = vector.broadcast %62 : vector<1x32xf32> to vector<256x32xf32>
    %64 = arith.addf %61, %63 : vector<256x32xf32>
    %65 = arith.addf %64, %31 : vector<256x32xf32>
    %cst_24 = arith.constant 0.000000e+00 : f32
    %66 = vector.broadcast %cst_24 : f32 to vector<256x32xf32>
    %67 = arith.maximumf %65, %66 : vector<256x32xf32>
    %cst_25 = arith.constant 7.500000e-01 : f32
    %68 = vector.broadcast %cst_25 : f32 to vector<256x32xf32>
    %69 = arith.mulf %68, %67 : vector<256x32xf32>
    %cst_26 = arith.constant 2.500000e-01 : f32
    %70 = vector.broadcast %cst_26 : f32 to vector<256x32xf32>
    %71 = arith.mulf %70, %33 : vector<256x32xf32>
    %72 = arith.addf %69, %71 : vector<256x32xf32>
    %c0_27 = arith.constant 0 : index
    %c0_28 = arith.constant 0 : index
    %73 = vector.load %arg4[%c0_27, %c0_28] : memref<32x128xf32, #tpu.memory_space<vmem>>, vector<32x128xf32>
    %cst_29 = arith.constant dense<0.000000e+00> : vector<256x128xf32>
    %74 = tpu.matmul %72, %73, %cst_29 {dimension_numbers = #tpu.dot_dimension_numbers<[1], [0], [0], [1], [0, 0, 1, 1], [], []>} : vector<256x32xf32>, vector<32x128xf32>, vector<256x128xf32> -> vector<256x128xf32>
    %c2 = arith.constant 2 : index
    %c0_30 = arith.constant 0 : index
    %75 = vector.load %arg5[%c2, %c0_30] : memref<8x128xf32, #tpu.memory_space<vmem>>, vector<1x128xf32>
    %76 = vector.broadcast %75 : vector<1x128xf32> to vector<256x128xf32>
    %77 = arith.addf %74, %76 : vector<256x128xf32>
    %c0_31 = arith.constant 0 : index
    %c0_32 = arith.constant 0 : index
    %78 = vector.load %arg6[%c0_31, %c0_32] : memref<256x128xf32, #tpu.memory_space<vmem>>, vector<256x128xf32>
    tpu.vector_store %arg6[%c0_31, %c0_32], %77 {strides = array<i32>} : memref<256x128xf32, #tpu.memory_space<vmem>>, vector<256x128xf32>,
    return
  }
  func.func @transform_0(%arg0: i32) -> (i32, i32) {
    %c0_i32 = arith.constant 0 : i32
    %c0_i32_0 = arith.constant 0 : i32
    return %arg0, %c0_i32 : i32, i32
  }
  func.func @transform_1(%arg0: i32) -> (i32, i32) {
    %c0_i32 = arith.constant 0 : i32
    %c0_i32_0 = arith.constant 0 : i32
    %c0_i32_1 = arith.constant 0 : i32
    return %c0_i32, %c0_i32_0 : i32, i32
  }
  func.func @transform_2(%arg0: i32) -> (i32, i32) {
    %c0_i32 = arith.constant 0 : i32
    %c0_i32_0 = arith.constant 0 : i32
    %c0_i32_1 = arith.constant 0 : i32
    return %c0_i32, %c0_i32_0 : i32, i32
  }
  func.func @transform_3(%arg0: i32) -> (i32, i32) {
    %c0_i32 = arith.constant 0 : i32
    %c0_i32_0 = arith.constant 0 : i32
    %c0_i32_1 = arith.constant 0 : i32
    return %c0_i32, %c0_i32_0 : i32, i32
  }
  func.func @transform_4(%arg0: i32) -> (i32, i32) {
    %c0_i32 = arith.constant 0 : i32
    %c0_i32_0 = arith.constant 0 : i32
    %c0_i32_1 = arith.constant 0 : i32
    return %c0_i32, %c0_i32_0 : i32, i32
  }
  func.func @transform_5(%arg0: i32) -> (i32, i32) {
    %c0_i32 = arith.constant 0 : i32
    %c0_i32_0 = arith.constant 0 : i32
    return %arg0, %c0_i32 : i32, i32
  }
}

</mosaic_0001>

<bundles_post_ra>
// kernel: tpu_custom_call.1
= control target key start
LH: loop header
LB: loop body
LE: loop exit
PB: predicated region body
PF: predicated region fallthrough
CT: control target
= control target key end

     0   :  { %vm60_vm0 = vcmask 130048   ;;  %s4453_s0 = inlined_call_operand.vmem [shape: f32[256,16], index: 0, kind: input, shape index: {}]   ;;  %s4454_s1 = inlined_call_operand.vmem [shape: f32[16,32], index: 1, kind: input, shape index: {}]   ;;  %s4455_s2 = inlined_call_operand.vmem [shape: f32[32,32], index: 2, kind: input, shape index: {}]   ;;  %s4456_s3 = inlined_call_operand.vmem [shape: f32[32,128], index: 3, kind: input, shape index: {}]   ;;  %s4457_s4 = inlined_call_operand.vmem [shape: f32[8,128], index: 4, kind: input, shape index: {}]   ;;  %s4458_s5 = inlined_call_operand.hbm [shape: f32[256,128], index: 5, kind: output, shape index: {}]  }
   0x1   :  { %v53_v0 = vld [vmem:[%s4454_s1] sm:$0xff]  ;;  %v54_v1 = vld [vmem:[%s4454_s1 + $0x8] sm:$0xff]  ;;  %v23_v5 = vld [vmem:[%s4453_s0 + $0x10] sm:$0xff] }
   0x2   :  { %v21_v2 = vld [vmem:[%s4453_s0] sm:$0xff]  ;;  %v2637_v3 = vpack.c.bf16 %v54_v1, %v53_v0  ;;  %v22_v4 = vld [vmem:[%s4453_s0 + $0x8] sm:$0xff]  ;;  %v39_v8 = vld [vmem:[%s4453_s0 + $0x90] sm:$0xff] }
   0x3   :  { %2477 = vmatprep.mubr.msk.f32.mxu0 %vm60_vm0, %v21_v2  ;;  %v37_v6 = vld [vmem:[%s4453_s0 + $0x80] sm:$0xff]  ;;  %v38_v7 = vld [vmem:[%s4453_s0 + $0x88] sm:$0xff]  ;;  %v24_v9 = vld [vmem:[%s4453_s0 + $0x18] sm:$0xff] }
   0x4   :  { %2638 = vmatprep.subr.bf16.mxu0 %v2637_v3  ;;  %2657 = vmatprep.subr.bf16.mxu1 %v2637_v3  ;;  %v25_v10 = vld [vmem:[%s4453_s0 + $0x20] sm:$0xff]  ;;  %v40_v11 = vld [vmem:[%s4453_s0 + $0x98] sm:$0xff] }
   0x5   :  { %2640 = vmatpush3.bf16.msra.mxu0 %v2637_v3  ;;  %2658 = vmatpush3.bf16.msra.mxu1 %v2637_v3  ;;  %v41_v12 = vld [vmem:[%s4453_s0 + $0xa0] sm:$0xff] }
   0x6   :  { %2501 = vmatprep.mubr.msk.f32.mxu1 %vm60_vm0, %v37_v6 }
   0x8   :  { %2478 = vmatmul.mubr.msk.f32.vlgmr.msra.gmra.mrb[0].mxu0 %vm60_vm0, %v22_v4  ;;  %2502 = vmatmul.mubr.msk.f32.vlgmr.msra.gmra.mrb[0].mxu1 %vm60_vm0, %v38_v7 }
   0x9   :  { %2480 = vmatprep.mubr.msk.f32.mxu0 %vm60_vm0, %v23_v5  ;;  %2504 = vmatprep.mubr.msk.f32.mxu1 %vm60_vm0, %v39_v8 }
   0xc   :  { %2481 = vmatmul.mubr.msk.f32.gmra.mrb[2].mxu0 %vm60_vm0, %v24_v9 }
   0xd   :  { %10 = vsyncpa [#allocation3], 0  ;;  %2483 = vmatprep.mubr.msk.f32.mxu0 %vm60_vm0, %v25_v10  ;;  %v26_v13 = vld [vmem:[%s4453_s0 + $0x28] sm:$0xff]  ;;  %2505 = vmatmul.mubr.msk.f32.gmra.mrb[2].mxu1 %vm60_vm0, %v40_v11  ;;  %v27_v14 = vld [vmem:[%s4453_s0 + $0x30] sm:$0xff]  ;;  %vm382_vm1 = vcmask 261120  }
   0xe   :  { %2507 = vmatprep.mubr.msk.f32.mxu1 %vm60_vm0, %v41_v12  ;;  %v42_v15 = vld [vmem:[%s4453_s0 + $0xa8] sm:$0xff]  ;;  %v43_v16 = vld [vmem:[%s4453_s0 + $0xb0] sm:$0xff]  ;;  %v28_v17 = vld [vmem:[%s4453_s0 + $0x38] sm:$0xff] }
   0xf   :  { %v29_v18 = vld [vmem:[%s4453_s0 + $0x40] sm:$0xff]  ;;  %v44_v19 = vld [vmem:[%s4453_s0 + $0xb8] sm:$0xff]  ;;  %v30_v21 = vld [vmem:[%s4453_s0 + $0x48] sm:$0xff] }
  0x10   :  { %2484 = vmatmul.mubr.msk.f32.gmra.mrb[4].mxu0 %vm60_vm0, %v26_v13  ;;  %v45_v20 = vld [vmem:[%s4453_s0 + $0xc0] sm:$0xff]  ;;  %v31_v22 = vld [vmem:[%s4453_s0 + $0x50] sm:$0xff]  ;;  %v46_v23 = vld [vmem:[%s4453_s0 + $0xc8] sm:$0xff] }
  0x11   :  { %2486 = vmatprep.mubr.msk.f32.mxu0 %vm60_vm0, %v27_v14  ;;  %2508 = vmatmul.mubr.msk.f32.gmra.mrb[4].mxu1 %vm60_vm0, %v42_v15  ;;  %v47_v24 = vld [vmem:[%s4453_s0 + $0xd0] sm:$0xff]  ;;  %v32_v25 = vld [vmem:[%s4453_s0 + $0x58] sm:$0xff]  ;;  %v33_v26 = vld [vmem:[%s4453_s0 + $0x60] sm:$0xff] }
  0x12   :  { %2510 = vmatprep.mubr.msk.f32.mxu1 %vm60_vm0, %v43_v16  ;;  %v48_v27 = vld [vmem:[%s4453_s0 + $0xd8] sm:$0xff]  ;;  %v49_v28 = vld [vmem:[%s4453_s0 + $0xe0] sm:$0xff]  ;;  %v34_v29 = vld [vmem:[%s4453_s0 + $0x68] sm:$0xff] }
  0x13   :  { %v35_v30 = vld [vmem:[%s4453_s0 + $0x70] sm:$0xff]  ;;  %v50_v31 = vld [vmem:[%s4453_s0 + $0xe8] sm:$0xff]  ;;  %v36_v33 = vld [vmem:[%s4453_s0 + $0x78] sm:$0xff] }
  0x14   :  { %2487 = vmatmul.mubr.msk.f32.gmra.mrb[6].mxu0 %vm60_vm0, %v28_v17  ;;  %v51_v32 = vld [vmem:[%s4453_s0 + $0xf0] sm:$0xff]  ;;  %v52_v34 = vld [vmem:[%s4453_s0 + $0xf8] sm:$0xff]  ;;  %v2984_v35 = vld [vmem:[%s4457_s4] ss:$0 sm:$0xff] }
  0x15   :  { %2489 = vmatprep.mubr.msk.f32.mxu0 %vm60_vm0, %v29_v18  ;;  %2511 = vmatmul.mubr.msk.f32.gmra.mrb[6].mxu1 %vm60_vm0, %v44_v19 }
  0x16   :  { %2513 = vmatprep.mubr.msk.f32.mxu1 %vm60_vm0, %v45_v20 }
  0x18   :  { %2490 = vmatmul.mubr.msk.f32.gmra.mrb[8].mxu0 %vm60_vm0, %v30_v21 }
  0x19   :  { %2492 = vmatprep.mubr.msk.f32.mxu0 %vm60_vm0, %v31_v22  ;;  %2514 = vmatmul.mubr.msk.f32.gmra.mrb[8].mxu1 %vm60_vm0, %v46_v23 }
  0x1a   :  { %2516 = vmatprep.mubr.msk.f32.mxu1 %vm60_vm0, %v47_v24 }
  0x1c   :  { %2493 = vmatmul.mubr.msk.f32.gmra.mrb[10].mxu0 %vm60_vm0, %v32_v25 }
  0x1d   :  { %2495 = vmatprep.mubr.msk.f32.mxu0 %vm60_vm0, %v33_v26  ;;  %2517 = vmatmul.mubr.msk.f32.gmra.mrb[10].mxu1 %vm60_vm0, %v48_v27 }
  0x1e   :  { %2519 = vmatprep.mubr.msk.f32.mxu1 %vm60_vm0, %v49_v28 }
  0x20   :  { %2496 = vmatmul.mubr.msk.f32.gmra.mrb[12].mxu0 %vm60_vm0, %v34_v29 }
  0x21   :  { %2498 = vmatprep.mubr.msk.f32.mxu0 %vm60_vm0, %v35_v30  ;;  %2520 = vmatmul.mubr.msk.f32.gmra.mrb[12].mxu1 %vm60_vm0, %v50_v31 }
  0x22   :  { %2522 = vmatprep.mubr.msk.f32.mxu1 %vm60_vm0, %v51_v32 }
  0x24   :  { %2499 = vmatmul.mubr.msk.f32.gmra.mrb[14].mxu0 %vm60_vm0, %v36_v33 }
  0x25   :  { %2523 = vmatmul.mubr.msk.f32.gmra.mrb[14].mxu1 %vm60_vm0, %v52_v34 }
  0xdb   :  { %v2479_v36 = vpop.f32.mrb[0].mxu0  ;;  %v2986_v38 = vpop.f32.mrb[0].mxu1 }
  0xdc   :  { %v223_v37 = vpop.f32.mrb[1].mxu0  ;;  %v2991_v40 = vpop.f32.mrb[1].mxu1  ;;  %v2994_v41 = vadd.f32 %v2479_v36, %v2984_v35 }
  0xdd   :  { %v2989_v39 = vadd.f32 %v2984_v35, %v223_v37  ;;  %v3075_v31 = vadd.f32 %v2984_v35, %v2991_v40 }
  0xde   :  { %v386_v51 = vsel %vm382_vm1, %v2994_v41, 0.0 }
  0xdf   :  { %v2482_v42 = vpop.f32.mrb[2].mxu0  ;;  %v383_v43 = vsel %vm382_vm1, %v2989_v39, 0.0  ;;  %v431_v40 = vsel %vm382_vm1, %v3075_v31, 0.0 }
  0xe0   :  { %v233_v44 = vpop.f32.mrb[3].mxu0  ;;  %384 = vadd.xlane.f32.xlu0 %v383_v43  ;;  %v2998_v45 = vpop.f32.mrb[2].mxu1  ;;  %v3006_v48 = vadd.f32 %v2482_v42, %v2984_v35  ;;  %v3095_v43 = vadd.f32 %v2986_v38, %v2984_v35 }
  0xe1   :  { %v3001_v46 = vadd.f32 %v2984_v35, %v233_v44  ;;  %v3003_v47 = vpop.f32.mrb[3].mxu1 }
  0xe2   :  { %v392_v58 = vsel %vm382_vm1, %v3006_v48, 0.0  ;;  %v3089_v42 = vadd.f32 %v2984_v35, %v3003_v47  ;;  %v434_v38 = vsel %vm382_vm1, %v3095_v43, 0.0 }
  0xe3   :  { %v2485_v49 = vpop.f32.mrb[4].mxu0  ;;  %v389_v50 = vsel %vm382_vm1, %v3001_v46, 0.0 }
  0xe4   :  { %v243_v52 = vpop.f32.mrb[5].mxu0  ;;  %390 = vadd.xlane.f32.xlu1 %v389_v50  ;;  %387 = vadd.xlane.f32.xlu0 %v386_v51  ;;  %v3012_v53 = vpop.f32.mrb[4].mxu1  ;;  %v3020_v56 = vadd.f32 %v2485_v49, %v2984_v35  ;;  %v437_v47 = vsel %vm382_vm1, %v3089_v42, 0.0  ;;  %v3107_v50 = vadd.f32 %v2998_v45, %v2984_v35 }
  0xe5   :  { %v3015_v54 = vadd.f32 %v2984_v35, %v243_v52  ;;  %v3017_v55 = vpop.f32.mrb[5].mxu1 }
  0xe6   :  { %v398_v2 = vsel %vm382_vm1, %v3020_v56, 0.0  ;;  %v3101_v49 = vadd.f32 %v2984_v35, %v3017_v55  ;;  %v3118_v55 = vadd.f32 %v3012_v53, %v2984_v35 }
  0xe7   :  { %v2488_v57 = vpop.f32.mrb[6].mxu0  ;;  %v395_v59 = vsel %vm382_vm1, %v3015_v54, 0.0 }
  0xe8   :  { %v253_v60 = vpop.f32.mrb[7].mxu0  ;;  %393 = vadd.xlane.f32.xlu1 %v392_v58  ;;  %396 = vadd.xlane.f32.xlu0 %v395_v59  ;;  %v3026_v61 = vpop.f32.mrb[6].mxu1  ;;  %v3032_v0 = vadd.f32 %v2488_v57, %v2984_v35  ;;  %v443_v52 = vsel %vm382_vm1, %v3101_v49, 0.0  ;;  %v440_v57 = vsel %vm382_vm1, %v3107_v50, 0.0 }
  0xe9   :  { %v3029_v62 = vadd.f32 %v2984_v35, %v253_v60  ;;  %v333_v63 = vpop.f32.mrb[7].mxu1  ;;  %v3129_v59 = vadd.f32 %v3026_v61, %v2984_v35  ;;  %v446_v60 = vsel %vm382_vm1, %v3118_v55, 0.0 }
  0xea   :  { %v404_v10 = vsel %vm382_vm1, %v3032_v0, 0.0  ;;  %v3112_v51 = vadd.f32 %v2984_v35, %v333_v63 }
  0xeb   :  { %v2491_v1 = vpop.f32.mrb[8].mxu0  ;;  %v401_v3 = vsel %vm382_vm1, %v3029_v62, 0.0 }
  0xec   :  { %v263_v4 = vpop.f32.mrb[9].mxu0  ;;  %399 = vadd.xlane.f32.xlu1 %v398_v2  ;;  %402 = vadd.xlane.f32.xlu0 %v401_v3  ;;  %v3038_v5 = vpop.f32.mrb[8].mxu1  ;;  %v3044_v8 = vadd.f32 %v2491_v1, %v2984_v35  ;;  %v449_v58 = vsel %vm382_vm1, %v3112_v51, 0.0  ;;  %v452_v2 = vsel %vm382_vm1, %v3129_v59, 0.0 }
  0xed   :  { %v3041_v6 = vadd.f32 %v2984_v35, %v263_v4  ;;  %v343_v7 = vpop.f32.mrb[9].mxu1  ;;  %v3140_v1 = vadd.f32 %v3038_v5, %v2984_v35 }
  0xee   :  { %v410_v18 = vsel %vm382_vm1, %v3044_v8, 0.0  ;;  %v3123_v45 = vadd.f32 %v2984_v35, %v343_v7 }
  0xef   :  { %v2494_v9 = vpop.f32.mrb[10].mxu0  ;;  %v407_v11 = vsel %vm382_vm1, %v3041_v6, 0.0  ;;  %v458_v7 = vsel %vm382_vm1, %v3140_v1, 0.0 }
  0xf0   :  { %v273_v12 = vpop.f32.mrb[11].mxu0  ;;  %405 = vadd.xlane.f32.xlu1 %v404_v10  ;;  %408 = vadd.xlane.f32.xlu0 %v407_v11  ;;  %v2518_v13 = vpop.f32.mrb[10].mxu1  ;;  %v3054_v16 = vadd.f32 %v2494_v9, %v2984_v35  ;;  %v455_v63 = vsel %vm382_vm1, %v3123_v45, 0.0 }
  0xf1   :  { %v3051_v14 = vadd.f32 %v2984_v35, %v273_v12  ;;  %v353_v15 = vpop.f32.mrb[11].mxu1  ;;  %v3150_v4 = vadd.f32 %v2518_v13, %v2984_v35 }
  0xf2   :  { %v416_v26 = vsel %vm382_vm1, %v3054_v16, 0.0  ;;  %v3134_v53 = vadd.f32 %v2984_v35, %v353_v15 }
  0xf3   :  { %v2497_v17 = vpop.f32.mrb[12].mxu0  ;;  %v413_v19 = vsel %vm382_vm1, %v3051_v14, 0.0  ;;  %v464_v11 = vsel %vm382_vm1, %v3150_v4, 0.0 }
  0xf4   :  { %v283_v20 = vpop.f32.mrb[13].mxu0  ;;  %411 = vadd.xlane.f32.xlu1 %v410_v18  ;;  %414 = vadd.xlane.f32.xlu0 %v413_v19  ;;  %v2521_v21 = vpop.f32.mrb[12].mxu1  ;;  %v3064_v24 = vadd.f32 %v2497_v17, %v2984_v35  ;;  %v461_v3 = vsel %vm382_vm1, %v3134_v53, 0.0  ;;  %v907_v17 = vld [vmem:[%s4455_s2 + $0x8] sm:$0xff] }
  0xf5   :  { %v3061_v22 = vadd.f32 %v2984_v35, %v283_v20  ;;  %v363_v23 = vpop.f32.mrb[13].mxu1  ;;  %v3160_v10 = vadd.f32 %v2521_v21, %v2984_v35 }
  0xf6   :  { %v422_v36 = vsel %vm382_vm1, %v3064_v24, 0.0  ;;  %v3145_v61 = vadd.f32 %v2984_v35, %v363_v23 }
  0xf7   :  { %v2500_v25 = vpop.f32.mrb[14].mxu0  ;;  %v419_v27 = vsel %vm382_vm1, %v3061_v22, 0.0  ;;  %v470_v13 = vsel %vm382_vm1, %v3160_v10, 0.0 }
  0xf8   :  { %v293_v28 = vpop.f32.mrb[15].mxu0  ;;  %417 = vadd.xlane.f32.xlu1 %v416_v26  ;;  %420 = vadd.xlane.f32.xlu0 %v419_v27  ;;  %v2524_v29 = vpop.f32.mrb[14].mxu1  ;;  %v3081_v34 = vadd.f32 %v2500_v25, %v2984_v35  ;;  %v467_v9 = vsel %vm382_vm1, %v3145_v61, 0.0 }
  0xf9   :  { %v3071_v30 = vadd.f32 %v2984_v35, %v293_v28  ;;  %v3078_v32 = vadd.f32 %v2524_v29, %v2984_v35  ;;  %v373_v33 = vpop.f32.mrb[15].mxu1 }
  0xfa   :  { %v428_v44 = vsel %vm382_vm1, %v3081_v34, 0.0  ;;  %v3155_v5 = vadd.f32 %v2984_v35, %v373_v33  ;;  %v906_v35 = vld [vmem:[%s4455_s2] sm:$0xff] }
  0xfb   :  { %v425_v37 = vsel %vm382_vm1, %v3071_v30, 0.0  ;;  %v476_v15 = vsel %vm382_vm1, %v3078_v32, 0.0  ;;  %v2641_v18 = vpack.c.bf16 %v907_v17, %v906_v35 }
  0xfc   :  { %423 = vadd.xlane.f32.xlu1 %v422_v36  ;;  %426 = vadd.xlane.f32.xlu0 %v425_v37  ;;  %v473_v12 = vsel %vm382_vm1, %v3155_v5, 0.0 }
  0xfd   :  { %2642 = vmatprep.subr.bf16.mxu1 %v2641_v18 }
  0xfe   :  { %2644 = vmatpush3.bf16.msra.mxu1 %v2641_v18 }
 0x100   :  { %429 = vadd.xlane.f32.xlu1 %v428_v44  ;;  %432 = vadd.xlane.f32.xlu0 %v431_v40 }
 0x104   :  { %435 = vadd.xlane.f32.xlu1 %v434_v38  ;;  %438 = vadd.xlane.f32.xlu0 %v437_v47 }
 0x108   :  { %441 = vadd.xlane.f32.xlu1 %v440_v57  ;;  %444 = vadd.xlane.f32.xlu0 %v443_v52 }
 0x10c   :  { %447 = vadd.xlane.f32.xlu1 %v446_v60  ;;  %450 = vadd.xlane.f32.xlu0 %v449_v58 }
 0x110   :  { %453 = vadd.xlane.f32.xlu1 %v452_v2  ;;  %456 = vadd.xlane.f32.xlu0 %v455_v63 }
 0x114   :  { %459 = vadd.xlane.f32.xlu1 %v458_v7  ;;  %462 = vadd.xlane.f32.xlu0 %v461_v3 }
 0x118   :  { %465 = vadd.xlane.f32.xlu1 %v464_v11  ;;  %468 = vadd.xlane.f32.xlu0 %v467_v9 }
 0x11c   :  { %471 = vadd.xlane.f32.xlu1 %v470_v13  ;;  %474 = vadd.xlane.f32.xlu0 %v473_v12 }
 0x120   :  { %477 = vadd.xlane.f32.xlu1 %v476_v15 }
 0x16d   :  { %v385_v19 = vpop.xlane.xlu0 %384 }
 0x16e   :  { %v480_v20 = vmul.f32 0.03125, %v385_v19 }
 0x170   :  { %v3177_v21 = vsub.f32 %v2989_v39, %v480_v20 }
 0x171   :  { %v391_v23 = vpop.xlane.xlu1 %390  ;;  %v388_v25 = vpop.xlane.xlu0 %387 }
 0x172   :  { %v482_v26 = vmul.f32 0.03125, %v391_v23  ;;  %v481_v27 = vmul.f32 0.03125, %v388_v25  ;;  %v544_v28 = vmul.f32 %v3177_v21, %v3177_v21 }
 0x174   :  { %v3182_v29 = vsub.f32 %v3001_v46, %v482_v26  ;;  %v3185_v33 = vsub.f32 %v2994_v41, %v481_v27  ;;  %v576_v36 = vsel %vm382_vm1, %v544_v28, 0.0 }
 0x175   :  { %v394_v37 = vpop.xlane.xlu1 %393  ;;  %577 = vadd.xlane.f32.xlu0 %v576_v36  ;;  %v397_v40 = vpop.xlane.xlu0 %396 }
 0x176   :  { %v483_v39 = vmul.f32 0.03125, %v394_v37  ;;  %v484_v44 = vmul.f32 0.03125, %v397_v40  ;;  %v546_v47 = vmul.f32 %v3182_v29, %v3182_v29  ;;  %v545_v38 = vmul.f32 %v3185_v33, %v3185_v33 }
 0x178   :  { %v3193_v52 = vsub.f32 %v3006_v48, %v483_v39  ;;  %v3196_v46 = vsub.f32 %v3015_v54, %v484_v44  ;;  %v582_v41 = vsel %vm382_vm1, %v546_v47, 0.0  ;;  %v579_v57 = vsel %vm382_vm1, %v545_v38, 0.0 }
 0x179   :  { %v400_v58 = vpop.xlane.xlu1 %399  ;;  %583 = vadd.xlane.f32.xlu0 %v582_v41  ;;  %580 = vadd.xlane.f32.xlu1 %v579_v57  ;;  %v403_v60 = vpop.xlane.xlu0 %402 }
 0x17a   :  { %v485_v63 = vmul.f32 0.03125, %v400_v58  ;;  %v486_v2 = vmul.f32 0.03125, %v403_v60  ;;  %v547_v3 = vmul.f32 %v3193_v52, %v3193_v52  ;;  %v548_v48 = vmul.f32 %v3196_v46, %v3196_v46 }
 0x17c   :  { %v3205_v7 = vsub.f32 %v3020_v56, %v485_v63  ;;  %v3208_v54 = vsub.f32 %v3029_v62, %v486_v2  ;;  %v585_v9 = vsel %vm382_vm1, %v547_v3, 0.0  ;;  %v588_v11 = vsel %vm382_vm1, %v548_v48, 0.0 }
 0x17d   :  { %v406_v12 = vpop.xlane.xlu1 %405  ;;  %586 = vadd.xlane.f32.xlu1 %v585_v9  ;;  %589 = vadd.xlane.f32.xlu0 %v588_v11  ;;  %v409_v13 = vpop.xlane.xlu0 %408 }
 0x17e   :  { %v487_v15 = vmul.f32 0.03125, %v406_v12  ;;  %v488_v35 = vmul.f32 0.03125, %v409_v13  ;;  %v549_v17 = vmul.f32 %v3205_v7, %v3205_v7  ;;  %v550_v56 = vmul.f32 %v3208_v54, %v3208_v54 }
 0x180   :  { %v3217_v18 = vsub.f32 %v3032_v0, %v487_v15  ;;  %v3220_v62 = vsub.f32 %v3041_v6, %v488_v35  ;;  %v591_v19 = vsel %vm382_vm1, %v549_v17, 0.0  ;;  %v594_v20 = vsel %vm382_vm1, %v550_v56, 0.0 }
 0x181   :  { %v412_v23 = vpop.xlane.xlu1 %411  ;;  %592 = vadd.xlane.f32.xlu1 %v591_v19  ;;  %595 = vadd.xlane.f32.xlu0 %v594_v20  ;;  %v415_v25 = vpop.xlane.xlu0 %414 }
 0x182   :  { %v489_v26 = vmul.f32 0.03125, %v412_v23  ;;  %v490_v27 = vmul.f32 0.03125, %v415_v25  ;;  %v551_v28 = vmul.f32 %v3217_v18, %v3217_v18  ;;  %v552_v0 = vmul.f32 %v3220_v62, %v3220_v62 }
 0x184   :  { %v3229_v36 = vsub.f32 %v3044_v8, %v489_v26  ;;  %v3232_v6 = vsub.f32 %v3051_v14, %v490_v27  ;;  %v597_v37 = vsel %vm382_vm1, %v551_v28, 0.0  ;;  %v600_v40 = vsel %vm382_vm1, %v552_v0, 0.0 }
 0x185   :  { %v418_v39 = vpop.xlane.xlu1 %417  ;;  %598 = vadd.xlane.f32.xlu1 %v597_v37  ;;  %601 = vadd.xlane.f32.xlu0 %v600_v40  ;;  %v421_v44 = vpop.xlane.xlu0 %420 }
 0x186   :  { %v491_v47 = vmul.f32 0.03125, %v418_v39  ;;  %v492_v38 = vmul.f32 0.03125, %v421_v44  ;;  %v553_v41 = vmul.f32 %v3229_v36, %v3229_v36  ;;  %v554_v8 = vmul.f32 %v3232_v6, %v3232_v6 }
 0x188   :  { %v3241_v57 = vsub.f32 %v3054_v16, %v491_v47  ;;  %v3244_v14 = vsub.f32 %v3061_v22, %v492_v38  ;;  %v603_v58 = vsel %vm382_vm1, %v553_v41, 0.0  ;;  %v606_v60 = vsel %vm382_vm1, %v554_v8, 0.0 }
 0x189   :  { %v424_v63 = vpop.xlane.xlu1 %423  ;;  %604 = vadd.xlane.f32.xlu1 %v603_v58  ;;  %607 = vadd.xlane.f32.xlu0 %v606_v60  ;;  %v427_v2 = vpop.xlane.xlu0 %426 }
 0x18a   :  { %v493_v3 = vmul.f32 0.03125, %v424_v63  ;;  %v494_v48 = vmul.f32 0.03125, %v427_v2  ;;  %v555_v9 = vmul.f32 %v3241_v57, %v3241_v57  ;;  %v556_v16 = vmul.f32 %v3244_v14, %v3244_v14 }
 0x18c   :  { %v3253_v11 = vsub.f32 %v3064_v24, %v493_v3  ;;  %v3256_v22 = vsub.f32 %v3071_v30, %v494_v48  ;;  %v609_v12 = vsel %vm382_vm1, %v555_v9, 0.0  ;;  %v612_v13 = vsel %vm382_vm1, %v556_v16, 0.0  ;;  %v908_v3 = vld [vmem:[%s4455_s2 + $0x10] sm:$0xff]  ;;  %v909_v48 = vld [vmem:[%s4455_s2 + $0x18] sm:$0xff] }
 0x18d   :  { %v430_v15 = vpop.xlane.xlu1 %429  ;;  %610 = vadd.xlane.f32.xlu1 %v609_v12  ;;  %613 = vadd.xlane.f32.xlu0 %v612_v13  ;;  %v433_v35 = vpop.xlane.xlu0 %432  ;;  %v2645_v16 = vpack.c.bf16 %v909_v48, %v908_v3 }
 0x18e   :  { %v495_v17 = vmul.f32 0.03125, %v430_v15  ;;  %v496_v56 = vmul.f32 0.03125, %v433_v35  ;;  %v557_v19 = vmul.f32 %v3253_v11, %v3253_v11  ;;  %v558_v24 = vmul.f32 %v3256_v22, %v3256_v22 }
 0x18f   :  { %2646 = vmatprep.subr.bf16.mxu1 %v2645_v16 }
 0x190   :  { %v3265_v20 = vsub.f32 %v3081_v34, %v495_v17  ;;  %v3268_v30 = vsub.f32 %v3075_v31, %v496_v56  ;;  %v615_v23 = vsel %vm382_vm1, %v557_v19, 0.0  ;;  %v618_v25 = vsel %vm382_vm1, %v558_v24, 0.0  ;;  %2648 = vmatpush3.bf16.msra.mxu1 %v2645_v16 }
 0x191   :  { %v436_v26 = vpop.xlane.xlu1 %435  ;;  %616 = vadd.xlane.f32.xlu1 %v615_v23  ;;  %619 = vadd.xlane.f32.xlu0 %v618_v25  ;;  %v439_v27 = vpop.xlane.xlu0 %438 }
 0x192   :  { %v497_v28 = vmul.f32 0.03125, %v436_v26  ;;  %v498_v0 = vmul.f32 0.03125, %v439_v27  ;;  %v559_v37 = vmul.f32 %v3265_v20, %v3265_v20  ;;  %v560_v34 = vmul.f32 %v3268_v30, %v3268_v30 }
 0x194   :  { %v3277_v40 = vsub.f32 %v3095_v43, %v497_v28  ;;  %v3280_v31 = vsub.f32 %v3089_v42, %v498_v0  ;;  %v621_v39 = vsel %vm382_vm1, %v559_v37, 0.0  ;;  %v624_v44 = vsel %vm382_vm1, %v560_v34, 0.0 }
 0x195   :  { %v442_v47 = vpop.xlane.xlu1 %441  ;;  %622 = vadd.xlane.f32.xlu1 %v621_v39  ;;  %625 = vadd.xlane.f32.xlu0 %v624_v44  ;;  %v445_v38 = vpop.xlane.xlu0 %444 }
 0x196   :  { %v499_v41 = vmul.f32 0.03125, %v442_v47  ;;  %v500_v8 = vmul.f32 0.03125, %v445_v38  ;;  %v561_v58 = vmul.f32 %v3277_v40, %v3277_v40  ;;  %v562_v43 = vmul.f32 %v3280_v31, %v3280_v31 }
 0x198   :  { %v3289_v60 = vsub.f32 %v3107_v50, %v499_v41  ;;  %v3292_v42 = vsub.f32 %v3101_v49, %v500_v8  ;;  %v627_v63 = vsel %vm382_vm1, %v561_v58, 0.0  ;;  %v630_v2 = vsel %vm382_vm1, %v562_v43, 0.0 }
 0x199   :  { %v448_v9 = vpop.xlane.xlu1 %447  ;;  %628 = vadd.xlane.f32.xlu1 %v627_v63  ;;  %631 = vadd.xlane.f32.xlu0 %v630_v2  ;;  %v451_v50 = vpop.xlane.xlu0 %450 }
 0x19a   :  { %v501_v12 = vmul.f32 0.03125, %v448_v9  ;;  %v502_v49 = vmul.f32 0.03125, %v451_v50  ;;  %v563_v13 = vmul.f32 %v3289_v60, %v3289_v60  ;;  %v564_v15 = vmul.f32 %v3292_v42, %v3292_v42 }
 0x19c   :  { %v3307_v35 = vsub.f32 %v3118_v55, %v501_v12  ;;  %v3310_v17 = vsub.f32 %v3112_v51, %v502_v49  ;;  %v633_v56 = vsel %vm382_vm1, %v563_v13, 0.0  ;;  %v636_v19 = vsel %vm382_vm1, %v564_v15, 0.0 }
 0x19d   :  { %v454_v24 = vpop.xlane.xlu1 %453  ;;  %634 = vadd.xlane.f32.xlu1 %v633_v56  ;;  %637 = vadd.xlane.f32.xlu0 %v636_v19  ;;  %v457_v23 = vpop.xlane.xlu0 %456 }
 0x19e   :  { %v503_v25 = vmul.f32 0.03125, %v454_v24  ;;  %v504_v26 = vmul.f32 0.03125, %v457_v23  ;;  %v565_v27 = vmul.f32 %v3307_v35, %v3307_v35  ;;  %v566_v55 = vmul.f32 %v3310_v17, %v3310_v17 }
 0x1a0   :  { %v3319_v51 = vsub.f32 %v3129_v59, %v503_v25  ;;  %v3322_v28 = vsub.f32 %v3123_v45, %v504_v26  ;;  %v639_v0 = vsel %vm382_vm1, %v565_v27, 0.0  ;;  %v642_v37 = vsel %vm382_vm1, %v566_v55, 0.0 }
 0x1a1   :  { %v460_v34 = vpop.xlane.xlu1 %459  ;;  %640 = vadd.xlane.f32.xlu1 %v639_v0  ;;  %643 = vadd.xlane.f32.xlu0 %v642_v37  ;;  %v463_v39 = vpop.xlane.xlu0 %462 }
 0x1a2   :  { %v505_v44 = vmul.f32 0.03125, %v460_v34  ;;  %v506_v47 = vmul.f32 0.03125, %v463_v39  ;;  %v567_v38 = vmul.f32 %v3319_v51, %v3319_v51  ;;  %v568_v59 = vmul.f32 %v3322_v28, %v3322_v28 }
 0x1a4   :  { %v3331_v41 = vsub.f32 %v3140_v1, %v505_v44  ;;  %v3334_v45 = vsub.f32 %v3134_v53, %v506_v47  ;;  %v645_v8 = vsel %vm382_vm1, %v567_v38, 0.0  ;;  %v648_v58 = vsel %vm382_vm1, %v568_v59, 0.0 }
 0x1a5   :  { %v466_v43 = vpop.xlane.xlu1 %465  ;;  %646 = vadd.xlane.f32.xlu1 %v645_v8  ;;  %649 = vadd.xlane.f32.xlu0 %v648_v58  ;;  %v469_v63 = vpop.xlane.xlu0 %468 }
 0x1a6   :  { %v507_v2 = vmul.f32 0.03125, %v466_v43  ;;  %v508_v3 = vmul.f32 0.03125, %v469_v63  ;;  %v569_v48 = vmul.f32 %v3331_v41, %v3331_v41  ;;  %v570_v1 = vmul.f32 %v3334_v45, %v3334_v45 }
 0x1a8   :  { %v3343_v9 = vsub.f32 %v3150_v4, %v507_v2  ;;  %v3346_v53 = vsub.f32 %v3145_v61, %v508_v3  ;;  %v651_v50 = vsel %vm382_vm1, %v569_v48, 0.0  ;;  %v654_v16 = vsel %vm382_vm1, %v570_v1, 0.0 }
 0x1a9   :  { %v472_v12 = vpop.xlane.xlu1 %471  ;;  %652 = vadd.xlane.f32.xlu1 %v651_v50  ;;  %655 = vadd.xlane.f32.xlu0 %v654_v16  ;;  %v475_v49 = vpop.xlane.xlu0 %474 }
 0x1aa   :  { %v509_v13 = vmul.f32 0.03125, %v472_v12  ;;  %v510_v15 = vmul.f32 0.03125, %v475_v49  ;;  %v571_v56 = vmul.f32 %v3343_v9, %v3343_v9  ;;  %v572_v4 = vmul.f32 %v3346_v53, %v3346_v53 }
 0x1ac   :  { %v3355_v19 = vsub.f32 %v3160_v10, %v509_v13  ;;  %v3358_v61 = vsub.f32 %v3155_v5, %v510_v15  ;;  %v657_v24 = vsel %vm382_vm1, %v571_v56, 0.0  ;;  %v660_v23 = vsel %vm382_vm1, %v572_v4, 0.0  ;;  %v3377_v56 = vld [vmem:[%s4457_s4 + $0x3] ss:$0 sm:$0xff] }
 0x1ad   :  { %v478_v25 = vpop.xlane.xlu1 %477  ;;  %658 = vadd.xlane.f32.xlu1 %v657_v24  ;;  %661 = vadd.xlane.f32.xlu0 %v660_v23 }
 0x1ae   :  { %v511_v26 = vmul.f32 0.03125, %v478_v25  ;;  %v573_v27 = vmul.f32 %v3355_v19, %v3355_v19  ;;  %v574_v55 = vmul.f32 %v3358_v61, %v3358_v61 }
 0x1b0   :  { %v3367_v10 = vsub.f32 %v3078_v32, %v511_v26  ;;  %v663_v5 = vsel %vm382_vm1, %v573_v27, 0.0  ;;  %v666_v0 = vsel %vm382_vm1, %v574_v55, 0.0  ;;  %v3383_v27 = vld [vmem:[%s4457_s4 + $0x5] ss:$0 sm:$0xff] }
 0x1b1   :  { %664 = vadd.xlane.f32.xlu1 %v663_v5  ;;  %667 = vadd.xlane.f32.xlu0 %v666_v0 }
 0x1b2   :  { %v575_v37 = vmul.f32 %v3367_v10, %v3367_v10 }
 0x1b4   :  { %v669_v34 = vsel %vm382_vm1, %v575_v37, 0.0 }
 0x1b5   :  { %670 = vadd.xlane.f32.xlu1 %v669_v34 }
 0x202   :  { %v578_v39 = vpop.xlane.xlu0 %577 }
 0x203   :  { %v672_v44 = vmul.f32 0.03125, %v578_v39 }
 0x205   :  { %v704_v47 = vadd.f32 1e-09, %v672_v44 }
 0x206   :  { %v581_v38 = vpop.xlane.xlu1 %580  ;;  %v584_v59 = vpop.xlane.xlu0 %583 }
 0x207   :  { %2662 = vrsqrt.f32 %v704_v47  ;;  %v673_v32 = vmul.f32 0.03125, %v581_v38  ;;  %v674_v8 = vmul.f32 0.03125, %v584_v59 }
 0x209   :  { %v705_v58 = vadd.f32 1e-09, %v673_v32  ;;  %v706_v43 = vadd.f32 1e-09, %v674_v8 }
 0x20a   :  { %v587_v63 = vpop.xlane.xlu1 %586  ;;  %v590_v2 = vpop.xlane.xlu0 %589 }
 0x20b   :  { %2664 = vrsqrt.f32 %v705_v58  ;;  %v675_v3 = vmul.f32 0.03125, %v587_v63  ;;  %v676_v48 = vmul.f32 0.03125, %v590_v2 }
 0x20c   :  { %2666 = vrsqrt.f32 %v706_v43 }
 0x20d   :  { %v707_v1 = vadd.f32 1e-09, %v675_v3  ;;  %v708_v50 = vadd.f32 1e-09, %v676_v48 }
 0x20e   :  { %v593_v16 = vpop.xlane.xlu1 %592  ;;  %v596_v12 = vpop.xlane.xlu0 %595 }
 0x20f   :  { %2668 = vrsqrt.f32 %v707_v1  ;;  %v677_v49 = vmul.f32 0.03125, %v593_v16  ;;  %v678_v13 = vmul.f32 0.03125, %v596_v12 }
 0x210   :  { %2670 = vrsqrt.f32 %v708_v50 }
 0x211   :  { %v2663_v15 = vpop.eup %2662  ;;  %v709_v4 = vadd.f32 1e-09, %v677_v49  ;;  %v710_v24 = vadd.f32 1e-09, %v678_v13 }
 0x212   :  { %v768_v23 = vmul.f32 %v2663_v15, %v3177_v21  ;;  %v599_v25 = vpop.xlane.xlu1 %598  ;;  %v602_v26 = vpop.xlane.xlu0 %601 }
 0x213   :  { %2672 = vrsqrt.f32 %v709_v4  ;;  %v679_v55 = vmul.f32 0.03125, %v599_v25  ;;  %v680_v5 = vmul.f32 0.03125, %v602_v26 }
 0x214   :  { %2674 = vrsqrt.f32 %v710_v24  ;;  %v805_v0 = vmul.f32 %v3377_v56, %v768_v23 }
 0x215   :  { %v2665_v37 = vpop.eup %2664  ;;  %v711_v34 = vadd.f32 1e-09, %v679_v55  ;;  %v712_v39 = vadd.f32 1e-09, %v680_v5 }
 0x216   :  { %v2667_v44 = vpop.eup %2666  ;;  %v769_v47 = vmul.f32 %v2665_v37, %v3185_v33  ;;  %v605_v21 = vpop.xlane.xlu1 %604  ;;  %v3388_v59 = vadd.f32 %v3383_v27, %v805_v0 }
 0x217   :  { %v608_v38 = vpop.xlane.xlu0 %607  ;;  %v770_v32 = vmul.f32 %v2667_v44, %v3182_v29  ;;  %2676 = vrsqrt.f32 %v711_v34  ;;  %v681_v8 = vmul.f32 0.03125, %v605_v21 }
 0x218   :  { %v682_v58 = vmul.f32 0.03125, %v608_v38  ;;  %v806_v43 = vmul.f32 %v3377_v56, %v769_v47  ;;  %2678 = vrsqrt.f32 %v712_v39  ;;  %v4490_v63 = vmax.f32 %v3388_v59, 0.0 }
 0x219   :  { %v2669_v2 = vpop.eup %2668  ;;  %v713_v3 = vadd.f32 1e-09, %v681_v8  ;;  %v807_v33 = vmul.f32 %v3377_v56, %v770_v32 }
 0x21a   :  { %v714_v48 = vadd.f32 1e-09, %v682_v58  ;;  %v2671_v1 = vpop.eup %2670  ;;  %v3395_v50 = vadd.f32 %v3383_v27, %v806_v43  ;;  %v771_v16 = vmul.f32 %v2669_v2, %v3193_v52  ;;  %v611_v29 = vpop.xlane.xlu1 %610  ;;  %2533 = vmatprep.mubr.msk.f32.mxu1 %vm382_vm1, %v4490_v63 }
 0x21b   :  { %v614_v12 = vpop.xlane.xlu0 %613  ;;  %v772_v49 = vmul.f32 %v2671_v1, %v3196_v46  ;;  %2680 = vrsqrt.f32 %v713_v3  ;;  %v683_v13 = vmul.f32 0.03125, %v611_v29  ;;  %v3404_v24 = vadd.f32 %v3383_v27, %v807_v33 }
 0x21c   :  { %v684_v15 = vmul.f32 0.03125, %v614_v12  ;;  %2682 = vrsqrt.f32 %v714_v48  ;;  %v4489_v4 = vmax.f32 %v3395_v50, 0.0  ;;  %v808_v23 = vmul.f32 %v3377_v56, %v771_v16 }
 0x21d   :  { %v2673_v52 = vpop.eup %2672  ;;  %v715_v25 = vadd.f32 1e-09, %v683_v13  ;;  %v809_v55 = vmul.f32 %v3377_v56, %v772_v49  ;;  %v4488_v34 = vmax.f32 %v3404_v24, 0.0 }
 0x21e   :  { %v716_v26 = vadd.f32 1e-09, %v684_v15  ;;  %v2675_v5 = vpop.eup %2674  ;;  %v773_v0 = vmul.f32 %v2673_v52, %v3205_v7  ;;  %v617_v46 = vpop.xlane.xlu1 %616  ;;  %2534 = vmatmul.mubr.msk.f32.vlgmr.msra.gmra.mrb[16].mxu1 %vm382_vm1, %v4489_v4  ;;  %v3414_v39 = vadd.f32 %v3383_v27, %v808_v23 }
 0x21f   :  { %v620_v37 = vpop.xlane.xlu0 %619  ;;  %v774_v44 = vmul.f32 %v2675_v5, %v3208_v54  ;;  %2684 = vrsqrt.f32 %v715_v25  ;;  %v685_v47 = vmul.f32 0.03125, %v617_v46  ;;  %2536 = vmatprep.mubr.msk.f32.mxu1 %vm382_vm1, %v4488_v34  ;;  %v3422_v38 = vadd.f32 %v3383_v27, %v809_v55 }
 0x220   :  { %v686_v21 = vmul.f32 0.03125, %v620_v37  ;;  %2686 = vrsqrt.f32 %v716_v26  ;;  %v4487_v7 = vmax.f32 %v3414_v39, 0.0  ;;  %v810_v32 = vmul.f32 %v3377_v56, %v773_v0 }
 0x221   :  { %v2677_v8 = vpop.eup %2676  ;;  %v717_v58 = vadd.f32 1e-09, %v685_v47  ;;  %v811_v54 = vmul.f32 %v3377_v56, %v774_v44  ;;  %v4486_v1 = vmax.f32 %v3422_v38, 0.0 }
 0x222   :  { %v718_v43 = vadd.f32 1e-09, %v686_v21  ;;  %v2679_v2 = vpop.eup %2678  ;;  %v775_v3 = vmul.f32 %v2677_v8, %v3217_v18  ;;  %v623_v48 = vpop.xlane.xlu1 %622  ;;  %2537 = vmatmul.mubr.msk.f32.gmra.mrb[18].mxu1 %vm382_vm1, %v4487_v7  ;;  %v3432_v16 = vadd.f32 %v3383_v27, %v810_v32 }
 0x223   :  { %v626_v33 = vpop.xlane.xlu0 %625  ;;  %v776_v29 = vmul.f32 %v2679_v2, %v3220_v62  ;;  %2688 = vrsqrt.f32 %v717_v58  ;;  %v687_v12 = vmul.f32 0.03125, %v623_v48  ;;  %2539 = vmatprep.mubr.msk.f32.mxu1 %vm382_vm1, %v4486_v1  ;;  %v3440_v13 = vadd.f32 %v3383_v27, %v811_v54 }
 0x224   :  { %v688_v49 = vmul.f32 0.03125, %v626_v33  ;;  %2690 = vrsqrt.f32 %v718_v43  ;;  %v4485_v18 = vmax.f32 %v3432_v16, 0.0  ;;  %v812_v15 = vmul.f32 %v3377_v56, %v775_v3 }
 0x225   :  { %v2681_v23 = vpop.eup %2680  ;;  %v719_v52 = vadd.f32 1e-09, %v687_v12  ;;  %v813_v62 = vmul.f32 %v3377_v56, %v776_v29  ;;  %v4484_v46 = vmax.f32 %v3440_v13, 0.0 }
 0x226   :  { %v720_v25 = vadd.f32 1e-09, %v688_v49  ;;  %v2683_v26 = vpop.eup %2682  ;;  %v777_v55 = vmul.f32 %v2681_v23, %v3229_v36  ;;  %v629_v5 = vpop.xlane.xlu1 %628  ;;  %2540 = vmatmul.mubr.msk.f32.gmra.mrb[20].mxu1 %vm382_vm1, %v4485_v18  ;;  %v3450_v37 = vadd.f32 %v3383_v27, %v812_v15 }
 0x227   :  { %v632_v0 = vpop.xlane.xlu0 %631  ;;  %v778_v44 = vmul.f32 %v2683_v26, %v3232_v6  ;;  %2692 = vrsqrt.f32 %v719_v52  ;;  %v689_v47 = vmul.f32 0.03125, %v629_v5  ;;  %2542 = vmatprep.mubr.msk.f32.mxu1 %vm382_vm1, %v4484_v46  ;;  %v3458_v32 = vadd.f32 %v3383_v27, %v813_v62 }
 0x228   :  { %v690_v21 = vmul.f32 0.03125, %v632_v0  ;;  %2694 = vrsqrt.f32 %v720_v25  ;;  %v4483_v36 = vmax.f32 %v3450_v37, 0.0  ;;  %v814_v8 = vmul.f32 %v3377_v56, %v777_v55 }
 0x229   :  { %v2685_v58 = vpop.eup %2684  ;;  %v721_v43 = vadd.f32 1e-09, %v689_v47  ;;  %v815_v6 = vmul.f32 %v3377_v56, %v778_v44  ;;  %v4482_v29 = vmax.f32 %v3458_v32, 0.0 }
 0x22a   :  { %v722_v54 = vadd.f32 1e-09, %v690_v21  ;;  %v2687_v2 = vpop.eup %2686  ;;  %v779_v3 = vmul.f32 %v2685_v58, %v3241_v57  ;;  %v635_v48 = vpop.xlane.xlu1 %634  ;;  %2543 = vmatmul.mubr.msk.f32.gmra.mrb[22].mxu1 %vm382_vm1, %v4483_v36  ;;  %v3468_v12 = vadd.f32 %v3383_v27, %v814_v8 }
 0x22b   :  { %v638_v33 = vpop.xlane.xlu0 %637  ;;  %v780_v49 = vmul.f32 %v2687_v2, %v3244_v14  ;;  %2696 = vrsqrt.f32 %v721_v43  ;;  %v691_v15 = vmul.f32 0.03125, %v635_v48  ;;  %2545 = vmatprep.mubr.msk.f32.mxu1 %vm382_vm1, %v4482_v29  ;;  %v3476_v52 = vadd.f32 %v3383_v27, %v815_v6 }
 0x22c   :  { %v692_v23 = vmul.f32 0.03125, %v638_v33  ;;  %2698 = vrsqrt.f32 %v722_v54  ;;  %v4481_v57 = vmax.f32 %v3468_v12, 0.0  ;;  %v816_v25 = vmul.f32 %v3377_v56, %v779_v3 }
 0x22d   :  { %v2689_v62 = vpop.eup %2688  ;;  %v723_v26 = vadd.f32 1e-09, %v691_v15  ;;  %v817_v14 = vmul.f32 %v3377_v56, %v780_v49  ;;  %v4480_v21 = vmax.f32 %v3476_v52, 0.0 }
 0x22e   :  { %v724_v55 = vadd.f32 1e-09, %v692_v23  ;;  %v2691_v5 = vpop.eup %2690  ;;  %v781_v0 = vmul.f32 %v2689_v62, %v3253_v11  ;;  %v641_v44 = vpop.xlane.xlu1 %640  ;;  %2546 = vmatmul.mubr.msk.f32.gmra.mrb[24].mxu1 %vm382_vm1, %v4481_v57  ;;  %v3486_v8 = vadd.f32 %v3383_v27, %v816_v25 }
 0x22f   :  { %v644_v47 = vpop.xlane.xlu0 %643  ;;  %v782_v58 = vmul.f32 %v2691_v5, %v3256_v22  ;;  %2700 = vrsqrt.f32 %v723_v26  ;;  %v693_v43 = vmul.f32 0.03125, %v641_v44  ;;  %2548 = vmatprep.mubr.msk.f32.mxu1 %vm382_vm1, %v4480_v21  ;;  %v3494_v6 = vadd.f32 %v3383_v27, %v817_v14 }
 0x230   :  { %v694_v54 = vmul.f32 0.03125, %v644_v47  ;;  %2702 = vrsqrt.f32 %v724_v55  ;;  %v4479_v11 = vmax.f32 %v3486_v8, 0.0  ;;  %v818_v2 = vmul.f32 %v3377_v56, %v781_v0 }
 0x231   :  { %4535 = vst [vmem:[#allocation5_spill] sm:$0xff] %v3494_v6  ;;  %v2693_v3 = vpop.eup %2692  ;;  %v725_v48 = vadd.f32 1e-09, %v693_v43  ;;  %v819_v22 = vmul.f32 %v3377_v56, %v782_v58  ;;  %v4478_v62 = vmax.f32 %v3494_v6, 0.0 }
 0x232   :  { %v726_v33 = vadd.f32 1e-09, %v694_v54  ;;  %v2695_v49 = vpop.eup %2694  ;;  %v783_v15 = vmul.f32 %v2693_v3, %v3265_v20  ;;  %v647_v23 = vpop.xlane.xlu1 %646  ;;  %2549 = vmatmul.mubr.msk.f32.gmra.mrb[26].mxu1 %vm382_vm1, %v4479_v11  ;;  %v3504_v26 = vadd.f32 %v3383_v27, %v818_v2 }
 0x233   :  { %v650_v25 = vpop.xlane.xlu0 %649  ;;  %v784_v55 = vmul.f32 %v2695_v49, %v3268_v30  ;;  %2704 = vrsqrt.f32 %v725_v48  ;;  %v695_v14 = vmul.f32 0.03125, %v647_v23  ;;  %2551 = vmatprep.mubr.msk.f32.mxu1 %vm382_vm1, %v4478_v62  ;;  %v3512_v0 = vadd.f32 %v3383_v27, %v819_v22 }
 0x234   :  { %4536 = vst [vmem:[#allocation6_spill] sm:$0xff] %v3504_v26  ;;  %v696_v5 = vmul.f32 0.03125, %v650_v25  ;;  %2706 = vrsqrt.f32 %v726_v33  ;;  %v4477_v20 = vmax.f32 %v3504_v26, 0.0  ;;  %v820_v44 = vmul.f32 %v3377_v56, %v783_v15 }
 0x235   :  { %4537 = vst [vmem:[#allocation7_spill] sm:$0xff] %v3512_v0  ;;  %v2697_v47 = vpop.eup %2696  ;;  %v727_v58 = vadd.f32 1e-09, %v695_v14  ;;  %v821_v30 = vmul.f32 %v3377_v56, %v784_v55  ;;  %v4476_v33 = vmax.f32 %v3512_v0, 0.0 }
 0x236   :  { %v728_v43 = vadd.f32 1e-09, %v696_v5  ;;  %v2699_v54 = vpop.eup %2698  ;;  %v785_v2 = vmul.f32 %v2697_v47, %v3277_v40  ;;  %v653_v3 = vpop.xlane.xlu1 %652  ;;  %2552 = vmatmul.mubr.msk.f32.gmra.mrb[28].mxu1 %vm382_vm1, %v4477_v20  ;;  %v3522_v22 = vadd.f32 %v3383_v27, %v820_v44 }
 0x237   :  { %v656_v48 = vpop.xlane.xlu0 %655  ;;  %v786_v49 = vmul.f32 %v2699_v54, %v3280_v31  ;;  %2708 = vrsqrt.f32 %v727_v58  ;;  %v697_v15 = vmul.f32 0.03125, %v653_v3  ;;  %2554 = vmatprep.mubr.msk.f32.mxu1 %vm382_vm1, %v4476_v33  ;;  %v3530_v25 = vadd.f32 %v3383_v27, %v821_v30 }
 0x238   :  { %4538 = vst [vmem:[#allocation8_spill] sm:$0xff] %v3522_v22  ;;  %v698_v23 = vmul.f32 0.03125, %v656_v48  ;;  %2710 = vrsqrt.f32 %v728_v43  ;;  %v4459_v40 = vmax.f32 %v3522_v22, 0.0  ;;  %v822_v55 = vmul.f32 %v3377_v56, %v785_v2 }
 0x239   :  { %4539 = vst [vmem:[#allocation9_spill] sm:$0xff] %v3530_v25  ;;  %v2701_v14 = vpop.eup %2700  ;;  %v729_v5 = vadd.f32 1e-09, %v697_v15  ;;  %v823_v31 = vmul.f32 %v3377_v56, %v786_v49  ;;  %v4461_v3 = vmax.f32 %v3530_v25, 0.0 }
 0x23a   :  { %v730_v44 = vadd.f32 1e-09, %v698_v23  ;;  %v2703_v47 = vpop.eup %2702  ;;  %v787_v58 = vmul.f32 %v2701_v14, %v3289_v60  ;;  %v659_v43 = vpop.xlane.xlu1 %658  ;;  %2555 = vmatmul.mubr.msk.f32.gmra.mrb[30].mxu1 %vm382_vm1, %v4459_v40  ;;  %v3540_v30 = vadd.f32 %v3383_v27, %v822_v55 }
 0x23b   :  { %v662_v54 = vpop.xlane.xlu0 %661  ;;  %v788_v2 = vmul.f32 %v2703_v47, %v3292_v42  ;;  %2712 = vrsqrt.f32 %v729_v5  ;;  %v699_v48 = vmul.f32 0.03125, %v659_v43  ;;  %2557 = vmatprep.mubr.msk.f32.mxu1 %vm382_vm1, %v4461_v3  ;;  %v3548_v49 = vadd.f32 %v3383_v27, %v823_v31 }
 0x23c   :  { %4540 = vst [vmem:[#allocation10_spill] sm:$0xff] %v3540_v30  ;;  %v700_v15 = vmul.f32 0.03125, %v662_v54  ;;  %2714 = vrsqrt.f32 %v730_v44  ;;  %v4460_v60 = vmax.f32 %v3540_v30, 0.0  ;;  %v824_v23 = vmul.f32 %v3377_v56, %v787_v58 }
 0x23d   :  { %4541 = vst [vmem:[#allocation11_spill] sm:$0xff] %v3548_v49  ;;  %v2705_v14 = vpop.eup %2704  ;;  %v731_v55 = vadd.f32 1e-09, %v699_v48  ;;  %v825_v42 = vmul.f32 %v3377_v56, %v788_v2  ;;  %v4475_v54 = vmax.f32 %v3548_v49, 0.0 }
 0x23e   :  { %v732_v40 = vadd.f32 1e-09, %v700_v15  ;;  %v2707_v5 = vpop.eup %2706  ;;  %v789_v47 = vmul.f32 %v2705_v14, %v3307_v35  ;;  %v665_v44 = vpop.xlane.xlu1 %664  ;;  %2558 = vmatmul.mubr.msk.f32.gmra.mrb[32].mxu1 %vm382_vm1, %v4460_v60  ;;  %v3558_v31 = vadd.f32 %v3383_v27, %v824_v23 }
 0x23f   :  { %v668_v43 = vpop.xlane.xlu0 %667  ;;  %v790_v58 = vmul.f32 %v2707_v5, %v3310_v17  ;;  %2716 = vrsqrt.f32 %v731_v55  ;;  %v701_v48 = vmul.f32 0.03125, %v665_v44  ;;  %2560 = vmatprep.mubr.msk.f32.mxu1 %vm382_vm1, %v4475_v54  ;;  %v3566_v2 = vadd.f32 %v3383_v27, %v825_v42 }
 0x240   :  { %4542 = vst [vmem:[#allocation12_spill] sm:$0xff] %v3558_v31  ;;  %v702_v15 = vmul.f32 0.03125, %v668_v43  ;;  %2718 = vrsqrt.f32 %v732_v40  ;;  %v4474_v35 = vmax.f32 %v3558_v31, 0.0  ;;  %v826_v14 = vmul.f32 %v3377_v56, %v789_v47 }
 0x241   :  { %4543 = vst [vmem:[#allocation13_spill] sm:$0xff] %v3566_v2  ;;  %v2709_v60 = vpop.eup %2708  ;;  %v733_v23 = vadd.f32 1e-09, %v701_v48  ;;  %v827_v17 = vmul.f32 %v3377_v56, %v790_v58  ;;  %v4473_v44 = vmax.f32 %v3566_v2, 0.0 }
 0x242   :  { %v734_v3 = vadd.f32 1e-09, %v702_v15  ;;  %v2711_v55 = vpop.eup %2710  ;;  %v791_v5 = vmul.f32 %v2709_v60, %v3319_v51  ;;  %v671_v40 = vpop.xlane.xlu1 %670  ;;  %2561 = vmatmul.mubr.msk.f32.gmra.mrb[34].mxu1 %vm382_vm1, %v4474_v35  ;;  %v3576_v42 = vadd.f32 %v3383_v27, %v826_v14 }
 0x243   :  { %v792_v47 = vmul.f32 %v2711_v55, %v3322_v28  ;;  %2720 = vrsqrt.f32 %v733_v23  ;;  %v703_v43 = vmul.f32 0.03125, %v671_v40  ;;  %v3580_v48 = vadd.f32 %v3383_v27, %v827_v17  ;;  %2563 = vmatprep.mubr.msk.f32.mxu1 %vm382_vm1, %v4473_v44 }
 0x244   :  { %4544 = vst [vmem:[#allocation14_spill] sm:$0xff] %v3576_v42  ;;  %2722 = vrsqrt.f32 %v734_v3  ;;  %v4472_v51 = vmax.f32 %v3576_v42, 0.0  ;;  %v828_v60 = vmul.f32 %v3377_v56, %v791_v5 }
 0x245   :  { %4545 = vst [vmem:[#allocation15_spill] sm:$0xff] %v3580_v48  ;;  %v2713_v58 = vpop.eup %2712  ;;  %v735_v15 = vadd.f32 1e-09, %v703_v43  ;;  %v4463_v14 = vmax.f32 %v3580_v48, 0.0  ;;  %v829_v28 = vmul.f32 %v3377_v56, %v792_v47 }
 0x246   :  { %v2715_v23 = vpop.eup %2714  ;;  %v793_v55 = vmul.f32 %v2713_v58, %v3331_v41  ;;  %2564 = vmatmul.mubr.msk.f32.gmra.mrb[36].mxu1 %vm382_vm1, %v4472_v51  ;;  %v3594_v3 = vadd.f32 %v3383_v27, %v828_v60 }
 0x247   :  { %v794_v17 = vmul.f32 %v2715_v23, %v3334_v45  ;;  %2724 = vrsqrt.f32 %v735_v15  ;;  %2566 = vmatprep.mubr.msk.f32.mxu1 %vm382_vm1, %v4463_v14  ;;  %v3601_v5 = vadd.f32 %v3383_v27, %v829_v28 }
 0x248   :  { %4546 = vst [vmem:[#allocation16_spill] sm:$0xff] %v3594_v3  ;;  %v4462_v40 = vmax.f32 %v3594_v3, 0.0  ;;  %v830_v41 = vmul.f32 %v3377_v56, %v793_v55 }
 0x249   :  { %4547 = vst [vmem:[#allocation17_spill] sm:$0xff] %v3601_v5  ;;  %v2717_v47 = vpop.eup %2716  ;;  %v4471_v43 = vmax.f32 %v3601_v5, 0.0  ;;  %v831_v60 = vmul.f32 %v3377_v56, %v794_v17 }
 0x24a   :  { %v2719_v58 = vpop.eup %2718  ;;  %v795_v45 = vmul.f32 %v2717_v47, %v3343_v9  ;;  %2567 = vmatmul.mubr.msk.f32.gmra.mrb[38].mxu1 %vm382_vm1, %v4462_v40  ;;  %v3612_v15 = vadd.f32 %v3383_v27, %v830_v41 }
 0x24b   :  { %v796_v28 = vmul.f32 %v2719_v58, %v3346_v53  ;;  %2569 = vmatprep.mubr.msk.f32.mxu1 %vm382_vm1, %v4471_v43  ;;  %v3619_v23 = vadd.f32 %v3383_v27, %v831_v60 }
 0x24c   :  { %4548 = vst [vmem:[#allocation18_spill] sm:$0xff] %v3612_v15  ;;  %v4464_v55 = vmax.f32 %v3612_v15, 0.0  ;;  %v832_v9 = vmul.f32 %v3377_v56, %v795_v45 }
 0x24d   :  { %4549 = vst [vmem:[#allocation19_spill] sm:$0xff] %v3619_v23  ;;  %v2721_v17 = vpop.eup %2720  ;;  %v4470_v47 = vmax.f32 %v3619_v23, 0.0  ;;  %v833_v40 = vmul.f32 %v3377_v56, %v796_v28 }
 0x24e   :  { %v2723_v41 = vpop.eup %2722  ;;  %v797_v14 = vmul.f32 %v2721_v17, %v3355_v19  ;;  %2570 = vmatmul.mubr.msk.f32.gmra.mrb[40].mxu1 %vm382_vm1, %v4464_v55  ;;  %v3630_v53 = vadd.f32 %v3383_v27, %v832_v9 }
 0x24f   :  { %v798_v60 = vmul.f32 %v2723_v41, %v3358_v61  ;;  %2572 = vmatprep.mubr.msk.f32.mxu1 %vm382_vm1, %v4470_v47  ;;  %v3637_v58 = vadd.f32 %v3383_v27, %v833_v40 }
 0x250   :  { %4550 = vst [vmem:[#allocation20_spill] sm:$0xff] %v3630_v53  ;;  %v4469_v45 = vmax.f32 %v3630_v53, 0.0  ;;  %v834_v19 = vmul.f32 %v3377_v56, %v797_v14 }
 0x251   :  { %4551 = vst [vmem:[#allocation21_spill] sm:$0xff] %v3637_v58  ;;  %v2725_v28 = vpop.eup %2724  ;;  %v4468_v17 = vmax.f32 %v3637_v58, 0.0  ;;  %v835_v55 = vmul.f32 %v3377_v56, %v798_v60 }
 0x252   :  { %v799_v9 = vmul.f32 %v2725_v28, %v3367_v10  ;;  %2573 = vmatmul.mubr.msk.f32.gmra.mrb[42].mxu1 %vm382_vm1, %v4469_v45  ;;  %v3648_v61 = vadd.f32 %v3383_v27, %v834_v19 }
 0x253   :  { %2575 = vmatprep.mubr.msk.f32.mxu1 %vm382_vm1, %v4468_v17  ;;  %v3654_v14 = vadd.f32 %v3383_v27, %v835_v55 }
 0x254   :  { %4552 = vst [vmem:[#allocation22_spill] sm:$0xff] %v3648_v61  ;;  %v4467_v40 = vmax.f32 %v3648_v61, 0.0  ;;  %v836_v41 = vmul.f32 %v3377_v56, %v799_v9  ;;  %v3675_v56 = vld [vmem:[%s4457_s4 + $0x1] ss:$0 sm:$0xff] }
 0x255   :  { %4553 = vst [vmem:[#allocation23_spill] sm:$0xff] %v3654_v14  ;;  %v4465_v10 = vmax.f32 %v3654_v14, 0.0 }
 0x256   :  { %2576 = vmatmul.mubr.msk.f32.gmra.mrb[44].mxu1 %vm382_vm1, %v4467_v40  ;;  %v3663_v60 = vadd.f32 %v3383_v27, %v836_v41 }
 0x257   :  { %2578 = vmatprep.mubr.msk.f32.mxu1 %vm382_vm1, %v4465_v10 }
 0x258   :  { %4554 = vst [vmem:[#allocation24_spill] sm:$0xff] %v3663_v60  ;;  %v4466_v55 = vmax.f32 %v3663_v60, 0.0 }
 0x25a   :  { %2579 = vmatmul.mubr.msk.f32.gmra.mrb[46].mxu1 %vm382_vm1, %v4466_v55 }
 0x2f1   :  { %v2535_v19 = vpop.f32.mrb[16].mxu1 }
 0x2f2   :  { %v3678_v28 = vadd.f32 %v2535_v19, %v3675_v56  ;;  %v1077_v27 = vpop.f32.mrb[17].mxu1 }
 0x2f3   :  { %v3681_v9 = vadd.f32 %v3675_v56, %v1077_v27 }
 0x2f4   :  { %v1239_v41 = vsel %vm382_vm1, %v3678_v28, 0.0 }
 0x2f5   :  { %1240 = vadd.xlane.f32.xlu1 %v1239_v41  ;;  %v2538_v10 = vpop.f32.mrb[18].mxu1  ;;  %v1236_v55 = vsel %vm382_vm1, %v3681_v9, 0.0 }
 0x2f6   :  { %v3688_v40 = vadd.f32 %v2538_v10, %v3675_v56  ;;  %1237 = vadd.xlane.f32.xlu0 %v1236_v55  ;;  %v1087_v17 = vpop.f32.mrb[19].mxu1 }
 0x2f7   :  { %v3691_v19 = vadd.f32 %v3675_v56, %v1087_v17 }
 0x2f8   :  { %v1245_v27 = vsel %vm382_vm1, %v3688_v40, 0.0 }
 0x2f9   :  { %1246 = vadd.xlane.f32.xlu1 %v1245_v27  ;;  %v2541_v45 = vpop.f32.mrb[20].mxu1  ;;  %v1242_v41 = vsel %vm382_vm1, %v3691_v19, 0.0 }
 0x2fa   :  { %v3698_v47 = vadd.f32 %v2541_v45, %v3675_v56  ;;  %1243 = vadd.xlane.f32.xlu0 %v1242_v41  ;;  %v1097_v43 = vpop.f32.mrb[21].mxu1 }
 0x2fb   :  { %v3701_v10 = vadd.f32 %v3675_v56, %v1097_v43 }
 0x2fc   :  { %v1251_v17 = vsel %vm382_vm1, %v3698_v47, 0.0 }
 0x2fd   :  { %1252 = vadd.xlane.f32.xlu1 %v1251_v17  ;;  %v2544_v55 = vpop.f32.mrb[22].mxu1  ;;  %v1248_v27 = vsel %vm382_vm1, %v3701_v10, 0.0 }
 0x2fe   :  { %v3708_v51 = vadd.f32 %v2544_v55, %v3675_v56  ;;  %1249 = vadd.xlane.f32.xlu0 %v1248_v27  ;;  %v1107_v44 = vpop.f32.mrb[23].mxu1 }
 0x2ff   :  { %v3711_v45 = vadd.f32 %v3675_v56, %v1107_v44 }
 0x300   :  { %v1257_v43 = vsel %vm382_vm1, %v3708_v51, 0.0 }
 0x301   :  { %1258 = vadd.xlane.f32.xlu1 %v1257_v43  ;;  %v2547_v41 = vpop.f32.mrb[24].mxu1  ;;  %v1254_v17 = vsel %vm382_vm1, %v3711_v45, 0.0 }
 0x302   :  { %v3718_v35 = vadd.f32 %v2547_v41, %v3675_v56  ;;  %1255 = vadd.xlane.f32.xlu0 %v1254_v17  ;;  %v1117_v54 = vpop.f32.mrb[25].mxu1 }
 0x303   :  { %v3721_v55 = vadd.f32 %v3675_v56, %v1117_v54 }
 0x304   :  { %v1263_v44 = vsel %vm382_vm1, %v3718_v35, 0.0 }
 0x305   :  { %1264 = vadd.xlane.f32.xlu1 %v1263_v44  ;;  %v2550_v27 = vpop.f32.mrb[26].mxu1  ;;  %v1260_v43 = vsel %vm382_vm1, %v3721_v55, 0.0 }
 0x306   :  { %v3728_v33 = vadd.f32 %v2550_v27, %v3675_v56  ;;  %1261 = vadd.xlane.f32.xlu0 %v1260_v43  ;;  %v1127_v20 = vpop.f32.mrb[27].mxu1 }
 0x307   :  { %v3731_v41 = vadd.f32 %v3675_v56, %v1127_v20 }
 0x308   :  { %v1269_v54 = vsel %vm382_vm1, %v3728_v33, 0.0 }
 0x309   :  { %1270 = vadd.xlane.f32.xlu1 %v1269_v54  ;;  %v2553_v17 = vpop.f32.mrb[28].mxu1  ;;  %v1266_v44 = vsel %vm382_vm1, %v3731_v41, 0.0 }
 0x30a   :  { %v3738_v62 = vadd.f32 %v2553_v17, %v3675_v56  ;;  %1267 = vadd.xlane.f32.xlu0 %v1266_v44  ;;  %v1137_v11 = vpop.f32.mrb[29].mxu1 }
 0x30b   :  { %v3741_v27 = vadd.f32 %v3675_v56, %v1137_v11 }
 0x30c   :  { %v1275_v20 = vsel %vm382_vm1, %v3738_v62, 0.0 }
 0x30d   :  { %1276 = vadd.xlane.f32.xlu1 %v1275_v20  ;;  %v2556_v43 = vpop.f32.mrb[30].mxu1  ;;  %v1272_v54 = vsel %vm382_vm1, %v3741_v27, 0.0 }
 0x30e   :  { %v3748_v21 = vadd.f32 %v2556_v43, %v3675_v56  ;;  %1273 = vadd.xlane.f32.xlu0 %v1272_v54  ;;  %v1147_v57 = vpop.f32.mrb[31].mxu1 }
 0x30f   :  { %v3751_v17 = vadd.f32 %v3675_v56, %v1147_v57 }
 0x310   :  { %v1281_v11 = vsel %vm382_vm1, %v3748_v21, 0.0 }
 0x311   :  { %1282 = vadd.xlane.f32.xlu1 %v1281_v11  ;;  %v2559_v44 = vpop.f32.mrb[32].mxu1  ;;  %v1278_v20 = vsel %vm382_vm1, %v3751_v17, 0.0 }
 0x312   :  { %v3758_v29 = vadd.f32 %v2559_v44, %v3675_v56  ;;  %1279 = vadd.xlane.f32.xlu0 %v1278_v20  ;;  %v1157_v36 = vpop.f32.mrb[33].mxu1 }
 0x313   :  { %v3761_v43 = vadd.f32 %v3675_v56, %v1157_v36 }
 0x314   :  { %v1287_v57 = vsel %vm382_vm1, %v3758_v29, 0.0 }
 0x315   :  { %1288 = vadd.xlane.f32.xlu1 %v1287_v57  ;;  %v2562_v54 = vpop.f32.mrb[34].mxu1  ;;  %v1284_v11 = vsel %vm382_vm1, %v3761_v43, 0.0 }
 0x316   :  { %v3768_v46 = vadd.f32 %v2562_v54, %v3675_v56  ;;  %1285 = vadd.xlane.f32.xlu0 %v1284_v11  ;;  %v1167_v18 = vpop.f32.mrb[35].mxu1 }
 0x317   :  { %v3771_v44 = vadd.f32 %v3675_v56, %v1167_v18 }
 0x318   :  { %v1293_v36 = vsel %vm382_vm1, %v3768_v46, 0.0 }
 0x319   :  { %1294 = vadd.xlane.f32.xlu1 %v1293_v36  ;;  %v2565_v20 = vpop.f32.mrb[36].mxu1  ;;  %v1290_v57 = vsel %vm382_vm1, %v3771_v44, 0.0 }
 0x31a   :  { %v3778_v1 = vadd.f32 %v2565_v20, %v3675_v56  ;;  %1291 = vadd.xlane.f32.xlu0 %v1290_v57  ;;  %v1177_v7 = vpop.f32.mrb[37].mxu1 }
 0x31b   :  { %v3781_v54 = vadd.f32 %v3675_v56, %v1177_v7 }
 0x31c   :  { %v1299_v18 = vsel %vm382_vm1, %v3778_v1, 0.0 }
 0x31d   :  { %1300 = vadd.xlane.f32.xlu1 %v1299_v18  ;;  %v2568_v11 = vpop.f32.mrb[38].mxu1  ;;  %v1296_v36 = vsel %vm382_vm1, %v3781_v54, 0.0 }
 0x31e   :  { %v3788_v34 = vadd.f32 %v2568_v11, %v3675_v56  ;;  %1297 = vadd.xlane.f32.xlu0 %v1296_v36  ;;  %v1187_v4 = vpop.f32.mrb[39].mxu1 }
 0x31f   :  { %v3791_v20 = vadd.f32 %v3675_v56, %v1187_v4 }
 0x320   :  { %v1305_v7 = vsel %vm382_vm1, %v3788_v34, 0.0 }
 0x321   :  { %1306 = vadd.xlane.f32.xlu1 %v1305_v7  ;;  %v2571_v57 = vpop.f32.mrb[40].mxu1  ;;  %v1302_v18 = vsel %vm382_vm1, %v3791_v20, 0.0 }
 0x322   :  { %v3798_v63 = vadd.f32 %v2571_v57, %v3675_v56  ;;  %1303 = vadd.xlane.f32.xlu0 %v1302_v18  ;;  %v1197_v60 = vpop.f32.mrb[41].mxu1 }
 0x323   :  { %v3801_v11 = vadd.f32 %v3675_v56, %v1197_v60 }
 0x324   :  { %v1311_v4 = vsel %vm382_vm1, %v3798_v63, 0.0 }
 0x325   :  { %1312 = vadd.xlane.f32.xlu1 %v1311_v4  ;;  %v2574_v36 = vpop.f32.mrb[42].mxu1  ;;  %v1308_v7 = vsel %vm382_vm1, %v3801_v11, 0.0 }
 0x326   :  { %v3808_v14 = vadd.f32 %v2574_v36, %v3675_v56  ;;  %1309 = vadd.xlane.f32.xlu0 %v1308_v7  ;;  %v1207_v61 = vpop.f32.mrb[43].mxu1 }
 0x327   :  { %v3811_v57 = vadd.f32 %v3675_v56, %v1207_v61 }
 0x328   :  { %v1317_v60 = vsel %vm382_vm1, %v3808_v14, 0.0 }
 0x329   :  { %1318 = vadd.xlane.f32.xlu1 %v1317_v60  ;;  %v2577_v18 = vpop.f32.mrb[44].mxu1  ;;  %v1314_v4 = vsel %vm382_vm1, %v3811_v57, 0.0 }
 0x32a   :  { %v3818_v58 = vadd.f32 %v2577_v18, %v3675_v56  ;;  %1315 = vadd.xlane.f32.xlu0 %v1314_v4  ;;  %v1217_v53 = vpop.f32.mrb[45].mxu1 }
 0x32b   :  { %v3821_v36 = vadd.f32 %v3675_v56, %v1217_v53 }
 0x32c   :  { %v1323_v61 = vsel %vm382_vm1, %v3818_v58, 0.0 }
 0x32d   :  { %1324 = vadd.xlane.f32.xlu1 %v1323_v61  ;;  %v2580_v7 = vpop.f32.mrb[46].mxu1  ;;  %v1320_v60 = vsel %vm382_vm1, %v3821_v36, 0.0  ;;  %v1886_v61 = vld [vmem:[%s4456_s3] sm:$0xff] }
 0x32e   :  { %v3828_v23 = vadd.f32 %v2580_v7, %v3675_v56  ;;  %1321 = vadd.xlane.f32.xlu0 %v1320_v60  ;;  %v1227_v15 = vpop.f32.mrb[47].mxu1  ;;  %v1887_v7 = vld [vmem:[%s4456_s3 + $0x8] sm:$0xff] }
 0x32f   :  { %v3831_v18 = vadd.f32 %v3675_v56, %v1227_v15  ;;  %v2649_v60 = vpack.c.bf16 %v1887_v7, %v1886_v61 }
 0x330   :  { %v1329_v53 = vsel %vm382_vm1, %v3828_v23, 0.0 }
 0x331   :  { %1330 = vadd.xlane.f32.xlu1 %v1329_v53  ;;  %v1326_v4 = vsel %vm382_vm1, %v3831_v18, 0.0  ;;  %2650 = vmatprep.subr.bf16.mxu0 %v2649_v60 }
 0x332   :  { %1327 = vadd.xlane.f32.xlu0 %v1326_v4  ;;  %2652 = vmatpush3.bf16.msra.mxu0 %v2649_v60 }
 0x382   :  { %v1241_v15 = vpop.xlane.xlu1 %1240 }
 0x383   :  { %v1333_v56 = vmul.f32 0.03125, %v1241_v15  ;;  %v1238_v5 = vpop.xlane.xlu0 %1237 }
 0x384   :  { %v1332_v3 = vmul.f32 0.03125, %v1238_v5 }
 0x385   :  { %v3844_v53 = vsub.f32 %v3678_v28, %v1333_v56 }
 0x386   :  { %v3847_v4 = vsub.f32 %v3681_v9, %v1332_v3  ;;  %v1247_v48 = vpop.xlane.xlu1 %1246 }
 0x387   :  { %v1335_v42 = vmul.f32 0.03125, %v1247_v48  ;;  %v1244_v2 = vpop.xlane.xlu0 %1243  ;;  %v1397_v31 = vmul.f32 %v3844_v53, %v3844_v53 }
 0x388   :  { %v1334_v49 = vmul.f32 0.03125, %v1244_v2  ;;  %v1396_v61 = vmul.f32 %v3847_v4, %v3847_v4 }
 0x389   :  { %v3854_v7 = vsub.f32 %v3688_v40, %v1335_v42  ;;  %v1431_v5 = vsel %vm382_vm1, %v1397_v31, 0.0 }
 0x38a   :  { %v3858_v28 = vsub.f32 %v3691_v19, %v1334_v49  ;;  %v1253_v3 = vpop.xlane.xlu1 %1252  ;;  %1432 = vadd.xlane.f32.xlu1 %v1431_v5  ;;  %v1428_v48 = vsel %vm382_vm1, %v1396_v61, 0.0 }
 0x38b   :  { %v1337_v9 = vmul.f32 0.03125, %v1253_v3  ;;  %1429 = vadd.xlane.f32.xlu0 %v1428_v48  ;;  %v1250_v60 = vpop.xlane.xlu0 %1249  ;;  %v1399_v2 = vmul.f32 %v3854_v7, %v3854_v7 }
 0x38c   :  { %v1336_v15 = vmul.f32 0.03125, %v1250_v60  ;;  %v1398_v42 = vmul.f32 %v3858_v28, %v3858_v28 }
 0x38d   :  { %v3866_v40 = vsub.f32 %v3698_v47, %v1337_v9  ;;  %v1437_v49 = vsel %vm382_vm1, %v1399_v2, 0.0 }
 0x38e   :  { %v3870_v31 = vsub.f32 %v3701_v10, %v1336_v15  ;;  %v1259_v19 = vpop.xlane.xlu1 %1258  ;;  %1438 = vadd.xlane.f32.xlu1 %v1437_v49  ;;  %v1434_v56 = vsel %vm382_vm1, %v1398_v42, 0.0 }
 0x38f   :  { %v1339_v61 = vmul.f32 0.03125, %v1259_v19  ;;  %1435 = vadd.xlane.f32.xlu0 %v1434_v56  ;;  %v1256_v5 = vpop.xlane.xlu0 %1255  ;;  %v1401_v3 = vmul.f32 %v3866_v40, %v3866_v40 }
 0x390   :  { %v1338_v48 = vmul.f32 0.03125, %v1256_v5  ;;  %v1400_v47 = vmul.f32 %v3870_v31, %v3870_v31 }
 0x391   :  { %v3878_v9 = vsub.f32 %v3708_v51, %v1339_v61  ;;  %v1443_v10 = vsel %vm382_vm1, %v1401_v3, 0.0 }
 0x392   :  { %v3882_v60 = vsub.f32 %v3711_v45, %v1338_v48  ;;  %v1265_v2 = vpop.xlane.xlu1 %1264  ;;  %1444 = vadd.xlane.f32.xlu1 %v1443_v10  ;;  %v1440_v15 = vsel %vm382_vm1, %v1400_v47, 0.0 }
 0x393   :  { %v1341_v42 = vmul.f32 0.03125, %v1265_v2  ;;  %1441 = vadd.xlane.f32.xlu0 %v1440_v15  ;;  %v1262_v49 = vpop.xlane.xlu0 %1261  ;;  %v1403_v19 = vmul.f32 %v3878_v9, %v3878_v9 }
 0x394   :  { %v1340_v56 = vmul.f32 0.03125, %v1262_v49  ;;  %v1402_v51 = vmul.f32 %v3882_v60, %v3882_v60 }
 0x395   :  { %v3890_v61 = vsub.f32 %v3718_v35, %v1341_v42  ;;  %v1449_v45 = vsel %vm382_vm1, %v1403_v19, 0.0 }
 0x396   :  { %v3894_v5 = vsub.f32 %v3721_v55, %v1340_v56  ;;  %v1271_v3 = vpop.xlane.xlu1 %1270  ;;  %1450 = vadd.xlane.f32.xlu1 %v1449_v45  ;;  %v1446_v48 = vsel %vm382_vm1, %v1402_v51, 0.0 }
 0x397   :  { %v1343_v47 = vmul.f32 0.03125, %v1271_v3  ;;  %1447 = vadd.xlane.f32.xlu0 %v1446_v48  ;;  %v1268_v10 = vpop.xlane.xlu0 %1267  ;;  %v1405_v2 = vmul.f32 %v3890_v61, %v3890_v61 }
 0x398   :  { %v1342_v15 = vmul.f32 0.03125, %v1268_v10  ;;  %v1404_v35 = vmul.f32 %v3894_v5, %v3894_v5 }
 0x399   :  { %v3902_v42 = vsub.f32 %v3728_v33, %v1343_v47  ;;  %v1455_v55 = vsel %vm382_vm1, %v1405_v2, 0.0 }
 0x39a   :  { %v3906_v49 = vsub.f32 %v3731_v41, %v1342_v15  ;;  %v1277_v19 = vpop.xlane.xlu1 %1276  ;;  %1456 = vadd.xlane.f32.xlu1 %v1455_v55  ;;  %v1452_v56 = vsel %vm382_vm1, %v1404_v35, 0.0 }
 0x39b   :  { %v1345_v51 = vmul.f32 0.03125, %v1277_v19  ;;  %1453 = vadd.xlane.f32.xlu0 %v1452_v56  ;;  %v1274_v45 = vpop.xlane.xlu0 %1273  ;;  %v1407_v3 = vmul.f32 %v3902_v42, %v3902_v42 }
 0x39c   :  { %v1344_v48 = vmul.f32 0.03125, %v1274_v45  ;;  %v1406_v33 = vmul.f32 %v3906_v49, %v3906_v49 }
 0x39d   :  { %v3914_v47 = vsub.f32 %v3738_v62, %v1345_v51  ;;  %v1461_v41 = vsel %vm382_vm1, %v1407_v3, 0.0 }
 0x39e   :  { %v3918_v10 = vsub.f32 %v3741_v27, %v1344_v48  ;;  %v1283_v2 = vpop.xlane.xlu1 %1282  ;;  %1462 = vadd.xlane.f32.xlu1 %v1461_v41  ;;  %v1458_v15 = vsel %vm382_vm1, %v1406_v33, 0.0 }
 0x39f   :  { %v1347_v35 = vmul.f32 0.03125, %v1283_v2  ;;  %1459 = vadd.xlane.f32.xlu0 %v1458_v15  ;;  %v1280_v55 = vpop.xlane.xlu0 %1279  ;;  %v1409_v19 = vmul.f32 %v3914_v47, %v3914_v47 }
 0x3a0   :  { %v1346_v56 = vmul.f32 0.03125, %v1280_v55  ;;  %v1408_v62 = vmul.f32 %v3918_v10, %v3918_v10 }
 0x3a1   :  { %v3926_v51 = vsub.f32 %v3748_v21, %v1347_v35  ;;  %v1467_v27 = vsel %vm382_vm1, %v1409_v19, 0.0 }
 0x3a2   :  { %v3930_v45 = vsub.f32 %v3751_v17, %v1346_v56  ;;  %v1289_v3 = vpop.xlane.xlu1 %1288  ;;  %1468 = vadd.xlane.f32.xlu1 %v1467_v27  ;;  %v1464_v48 = vsel %vm382_vm1, %v1408_v62, 0.0 }
 0x3a3   :  { %v1349_v33 = vmul.f32 0.03125, %v1289_v3  ;;  %1465 = vadd.xlane.f32.xlu0 %v1464_v48  ;;  %v1286_v41 = vpop.xlane.xlu0 %1285  ;;  %v1411_v2 = vmul.f32 %v3926_v51, %v3926_v51 }
 0x3a4   :  { %v1348_v15 = vmul.f32 0.03125, %v1286_v41  ;;  %v1410_v21 = vmul.f32 %v3930_v45, %v3930_v45 }
 0x3a5   :  { %v3938_v35 = vsub.f32 %v3758_v29, %v1349_v33  ;;  %v1473_v17 = vsel %vm382_vm1, %v1411_v2, 0.0 }
 0x3a6   :  { %v3942_v55 = vsub.f32 %v3761_v43, %v1348_v15  ;;  %v1295_v19 = vpop.xlane.xlu1 %1294  ;;  %1474 = vadd.xlane.f32.xlu1 %v1473_v17  ;;  %v1470_v56 = vsel %vm382_vm1, %v1410_v21, 0.0 }
 0x3a7   :  { %v1351_v62 = vmul.f32 0.03125, %v1295_v19  ;;  %1471 = vadd.xlane.f32.xlu0 %v1470_v56  ;;  %v1292_v27 = vpop.xlane.xlu0 %1291  ;;  %v1413_v3 = vmul.f32 %v3938_v35, %v3938_v35 }
 0x3a8   :  { %v1350_v48 = vmul.f32 0.03125, %v1292_v27  ;;  %v1412_v29 = vmul.f32 %v3942_v55, %v3942_v55 }
 0x3a9   :  { %v3950_v33 = vsub.f32 %v3768_v46, %v1351_v62  ;;  %v1479_v43 = vsel %vm382_vm1, %v1413_v3, 0.0 }
 0x3aa   :  { %v3954_v41 = vsub.f32 %v3771_v44, %v1350_v48  ;;  %v1301_v2 = vpop.xlane.xlu1 %1300  ;;  %1480 = vadd.xlane.f32.xlu1 %v1479_v43  ;;  %v1476_v15 = vsel %vm382_vm1, %v1412_v29, 0.0 }
 0x3ab   :  { %v1353_v21 = vmul.f32 0.03125, %v1301_v2  ;;  %1477 = vadd.xlane.f32.xlu0 %v1476_v15  ;;  %v1298_v17 = vpop.xlane.xlu0 %1297  ;;  %v1415_v19 = vmul.f32 %v3950_v33, %v3950_v33 }
 0x3ac   :  { %v1352_v56 = vmul.f32 0.03125, %v1298_v17  ;;  %v1414_v46 = vmul.f32 %v3954_v41, %v3954_v41 }
 0x3ad   :  { %v3962_v62 = vsub.f32 %v3778_v1, %v1353_v21  ;;  %v1485_v44 = vsel %vm382_vm1, %v1415_v19, 0.0 }
 0x3ae   :  { %v3966_v27 = vsub.f32 %v3781_v54, %v1352_v56  ;;  %v1307_v3 = vpop.xlane.xlu1 %1306  ;;  %1486 = vadd.xlane.f32.xlu1 %v1485_v44  ;;  %v1482_v48 = vsel %vm382_vm1, %v1414_v46, 0.0  ;;  %v1888_v46 = vld [vmem:[%s4456_s3 + $0x10] sm:$0xff]  ;;  %v1889_v44 = vld [vmem:[%s4456_s3 + $0x18] sm:$0xff] }
 0x3af   :  { %v1355_v29 = vmul.f32 0.03125, %v1307_v3  ;;  %1483 = vadd.xlane.f32.xlu0 %v1482_v48  ;;  %v1304_v43 = vpop.xlane.xlu0 %1303  ;;  %v1417_v2 = vmul.f32 %v3962_v62, %v3962_v62 }
 0x3b0   :  { %v1354_v15 = vmul.f32 0.03125, %v1304_v43  ;;  %v1416_v1 = vmul.f32 %v3966_v27, %v3966_v27 }
 0x3b1   :  { %v3974_v21 = vsub.f32 %v3788_v34, %v1355_v29  ;;  %v1491_v54 = vsel %vm382_vm1, %v1417_v2, 0.0 }
 0x3b2   :  { %v3978_v17 = vsub.f32 %v3791_v20, %v1354_v15  ;;  %v1313_v19 = vpop.xlane.xlu1 %1312  ;;  %1492 = vadd.xlane.f32.xlu1 %v1491_v54  ;;  %v1488_v56 = vsel %vm382_vm1, %v1416_v1, 0.0  ;;  %v2653_v20 = vpack.c.bf16 %v1889_v44, %v1888_v46 }
 0x3b3   :  { %4555 = vst [vmem:[#allocation25_spill] sm:$0xff] %v3974_v21  ;;  %v1357_v3 = vmul.f32 0.03125, %v1313_v19  ;;  %1489 = vadd.xlane.f32.xlu0 %v1488_v56  ;;  %v1310_v34 = vpop.xlane.xlu0 %1309  ;;  %v1419_v48 = vmul.f32 %v3974_v21, %v3974_v21 }
 0x3b4   :  { %4556 = vst [vmem:[#allocation26_spill] sm:$0xff] %v3978_v17  ;;  %v1356_v29 = vmul.f32 0.03125, %v1310_v34  ;;  %v1418_v43 = vmul.f32 %v3978_v17, %v3978_v17  ;;  %2654 = vmatprep.subr.bf16.mxu0 %v2653_v20 }
 0x3b5   :  { %v3992_v2 = vsub.f32 %v3798_v63, %v1357_v3  ;;  %v1497_v15 = vsel %vm382_vm1, %v1419_v48, 0.0  ;;  %2656 = vmatpush3.bf16.msra.mxu0 %v2653_v20 }
 0x3b6   :  { %v3996_v1 = vsub.f32 %v3801_v11, %v1356_v29  ;;  %v1319_v54 = vpop.xlane.xlu1 %1318  ;;  %1498 = vadd.xlane.f32.xlu1 %v1497_v15  ;;  %v1494_v19 = vsel %vm382_vm1, %v1418_v43, 0.0 }
 0x3b7   :  { %4557 = vst [vmem:[#allocation27_spill] sm:$0xff] %v3992_v2  ;;  %v1359_v56 = vmul.f32 0.03125, %v1319_v54  ;;  %1495 = vadd.xlane.f32.xlu0 %v1494_v19  ;;  %v1316_v46 = vpop.xlane.xlu0 %1315  ;;  %v1421_v44 = vmul.f32 %v3992_v2, %v3992_v2  ;;  %v4579_v2 = vmax.f32 %v3494_v6, 0.0 }
 0x3b8   :  { %4558 = vst [vmem:[#allocation28_spill] sm:$0xff] %v3996_v1  ;;  %v1358_v34 = vmul.f32 0.03125, %v1316_v46  ;;  %v1420_v63 = vmul.f32 %v3996_v1, %v3996_v1 }
 0x3b9   :  { %v4004_v3 = vsub.f32 %v3808_v14, %v1359_v56  ;;  %v1503_v11 = vsel %vm382_vm1, %v1421_v44, 0.0  ;;  %v4091_v17 = vmul.f32 0.25, %v4579_v2 }
 0x3ba   :  { %v4008_v48 = vsub.f32 %v3811_v57, %v1358_v34  ;;  %v1325_v29 = vpop.xlane.xlu1 %1324  ;;  %1504 = vadd.xlane.f32.xlu1 %v1503_v11  ;;  %v1500_v20 = vsel %vm382_vm1, %v1420_v63, 0.0 }
 0x3bb   :  { %4559 = vst [vmem:[#allocation29_spill] sm:$0xff] %v4004_v3  ;;  %v1361_v43 = vmul.f32 0.03125, %v1325_v29  ;;  %1501 = vadd.xlane.f32.xlu0 %v1500_v20  ;;  %v1322_v15 = vpop.xlane.xlu0 %1321  ;;  %v1423_v54 = vmul.f32 %v4004_v3, %v4004_v3  ;;  %4580 = vst [vmem:[#allocation37_spill] sm:$0xff] %v4091_v17  ;;  %v4591_v17 = vld [vmem:[#allocation11_spill] sm:$0xff] }
 0x3bc   :  { %4560 = vst [vmem:[#allocation30_spill] sm:$0xff] %v4008_v48  ;;  %v1360_v19 = vmul.f32 0.03125, %v1322_v15  ;;  %v1422_v14 = vmul.f32 %v4008_v48, %v4008_v48 }
 0x3bd   :  { %v4016_v56 = vsub.f32 %v3818_v58, %v1361_v43  ;;  %v1509_v57 = vsel %vm382_vm1, %v1423_v54, 0.0 }
 0x3be   :  { %v4020_v46 = vsub.f32 %v3821_v36, %v1360_v19  ;;  %1510 = vadd.xlane.f32.xlu1 %v1509_v57  ;;  %v1331_v44 = vpop.xlane.xlu1 %1330  ;;  %v1506_v34 = vsel %vm382_vm1, %v1422_v14, 0.0 }
 0x3bf   :  { %4561 = vst [vmem:[#allocation31_spill] sm:$0xff] %v4016_v56  ;;  %v1363_v63 = vmul.f32 0.03125, %v1331_v44  ;;  %1507 = vadd.xlane.f32.xlu0 %v1506_v34  ;;  %v1328_v11 = vpop.xlane.xlu0 %1327  ;;  %v1425_v29 = vmul.f32 %v4016_v56, %v4016_v56 }
 0x3c0   :  { %4562 = vst [vmem:[#allocation32_spill] sm:$0xff] %v4020_v46  ;;  %v1362_v20 = vmul.f32 0.03125, %v1328_v11  ;;  %v1424_v58 = vmul.f32 %v4020_v46, %v4020_v46 }
 0x3c1   :  { %v4028_v43 = vsub.f32 %v3828_v23, %v1363_v63  ;;  %v1515_v36 = vsel %vm382_vm1, %v1425_v29, 0.0 }
 0x3c2   :  { %v4032_v15 = vsub.f32 %v3831_v18, %v1362_v20  ;;  %1516 = vadd.xlane.f32.xlu1 %v1515_v36  ;;  %v1512_v54 = vsel %vm382_vm1, %v1424_v58, 0.0 }
 0x3c3   :  { %4563 = vst [vmem:[#allocation33_spill] sm:$0xff] %v4028_v43  ;;  %1513 = vadd.xlane.f32.xlu0 %v1512_v54  ;;  %v1427_v19 = vmul.f32 %v4028_v43, %v4028_v43 }
 0x3c4   :  { %4564 = vst [vmem:[#allocation34_spill] sm:$0xff] %v4032_v15  ;;  %v1426_v14 = vmul.f32 %v4032_v15, %v4032_v15  ;;  %v4565_v15 = vmax.f32 %v3388_v59, 0.0 }
 0x3c5   :  { %v1521_v57 = vsel %vm382_vm1, %v1427_v19, 0.0 }
 0x3c6   :  { %1522 = vadd.xlane.f32.xlu1 %v1521_v57  ;;  %v1518_v23 = vsel %vm382_vm1, %v1426_v14, 0.0  ;;  %v4043_v19 = vmul.f32 0.25, %v4565_v15  ;;  %v4566_v14 = vmax.f32 %v3395_v50, 0.0 }
 0x3c7   :  { %1519 = vadd.xlane.f32.xlu0 %v1518_v23 }
 0x3c8   :  { %v4047_v57 = vmul.f32 0.25, %v4566_v14 }
 0x417   :  { %v1433_v44 = vpop.xlane.xlu1 %1432 }
 0x418   :  { %v1525_v34 = vmul.f32 0.03125, %v1433_v44  ;;  %v1430_v18 = vpop.xlane.xlu0 %1429 }
 0x419   :  { %v1524_v63 = vmul.f32 0.03125, %v1430_v18 }
 0x41a   :  { %v1557_v11 = vadd.f32 1e-09, %v1525_v34  ;;  %v4567_v34 = vmax.f32 %v3404_v24, 0.0 }
 0x41b   :  { %v1556_v29 = vadd.f32 1e-09, %v1524_v63  ;;  %v1439_v20 = vpop.xlane.xlu1 %1438  ;;  %v4568_v63 = vmax.f32 %v3414_v39, 0.0 }
 0x41c   :  { %2726 = vrsqrt.f32 %v1557_v11  ;;  %v1527_v58 = vmul.f32 0.03125, %v1439_v20  ;;  %v1436_v36 = vpop.xlane.xlu0 %1435  ;;  %v4051_v18 = vmul.f32 0.25, %v4567_v34 }
 0x41d   :  { %2728 = vrsqrt.f32 %v1556_v29  ;;  %v1526_v54 = vmul.f32 0.03125, %v1436_v36  ;;  %v4055_v11 = vmul.f32 0.25, %v4568_v63  ;;  %v4569_v29 = vmax.f32 %v3422_v38, 0.0 }
 0x41e   :  { %v1559_v43 = vadd.f32 1e-09, %v1527_v58  ;;  %v4570_v36 = vmax.f32 %v3432_v16, 0.0  ;;  %v4572_v63 = vmax.f32 %v3450_v37, 0.0 }
 0x41f   :  { %v1558_v23 = vadd.f32 1e-09, %v1526_v54  ;;  %v1445_v44 = vpop.xlane.xlu1 %1444  ;;  %v4059_v20 = vmul.f32 0.25, %v4569_v29  ;;  %v4571_v54 = vmax.f32 %v3440_v13, 0.0  ;;  %v4573_v29 = vmax.f32 %v3458_v32, 0.0 }
 0x420   :  { %2730 = vrsqrt.f32 %v1559_v43  ;;  %v1529_v15 = vmul.f32 0.03125, %v1445_v44  ;;  %v1442_v58 = vpop.xlane.xlu0 %1441  ;;  %v4063_v14 = vmul.f32 0.25, %v4570_v36  ;;  %v4071_v56 = vmul.f32 0.25, %v4572_v63 }
 0x421   :  { %v4067_v46 = vmul.f32 0.25, %v4571_v54  ;;  %2732 = vrsqrt.f32 %v1558_v23  ;;  %v1528_v34 = vmul.f32 0.03125, %v1442_v58  ;;  %v4075_v48 = vmul.f32 0.25, %v4573_v29 }
 0x422   :  { %v1561_v43 = vadd.f32 1e-09, %v1529_v15  ;;  %v4574_v44 = vmax.f32 %v3468_v12, 0.0  ;;  %v4575_v36 = vmax.f32 %v3476_v52, 0.0  ;;  %v4577_v23 = vmax.f32 %v3486_v8, 0.0 }
 0x423   :  { %v1560_v54 = vadd.f32 1e-09, %v1528_v34  ;;  %v1451_v63 = vpop.xlane.xlu1 %1450  ;;  %v4581_v15 = vmax.f32 %v3504_v26, 0.0  ;;  %v4587_v34 = vmax.f32 %v3530_v25, 0.0 }
 0x424   :  { %v4079_v3 = vmul.f32 0.25, %v4574_v44  ;;  %v4083_v1 = vmul.f32 0.25, %v4575_v36  ;;  %v4087_v58 = vmul.f32 0.25, %v4577_v23  ;;  %v4583_v44 = vmax.f32 %v3512_v0, 0.0  ;;  %v4603_v0 = vld [vmem:[#allocation15_spill] sm:$0xff] }
 0x425   :  { %v4095_v29 = vmul.f32 0.25, %v4581_v15  ;;  %2734 = vrsqrt.f32 %v1561_v43  ;;  %v1531_v36 = vmul.f32 0.03125, %v1451_v63  ;;  %v4585_v23 = vmax.f32 %v3522_v22, 0.0  ;;  %v4120_v63 = vld [vmem:[%s4457_s4 + $0x4] ss:$0 sm:$0xff] }
 0x426   :  { %4576 = vst [vmem:[#allocation35_spill] sm:$0xff] %v4083_v1  ;;  %4578 = vst [vmem:[#allocation36_spill] sm:$0xff] %v4087_v58  ;;  %v4099_v21 = vmul.f32 0.25, %v4583_v44  ;;  %v1448_v1 = vpop.xlane.xlu0 %1447  ;;  %v4107_v6 = vmul.f32 0.25, %v4587_v34  ;;  %2736 = vrsqrt.f32 %v1560_v54  ;;  %v4589_v15 = vmax.f32 %v3540_v30, 0.0  ;;  %v2727_v43 = vpop.eup %2726 }
 0x427   :  { %4582 = vst [vmem:[#allocation38_spill] sm:$0xff] %v4095_v29  ;;  %v4103_v58 = vmul.f32 0.25, %v4585_v23  ;;  %v1530_v2 = vmul.f32 0.03125, %v1448_v1  ;;  %v4592_v44 = vmax.f32 %v4591_v17, 0.0  ;;  %v1563_v23 = vadd.f32 1e-09, %v1531_v36 }
 0x428   :  { %4584 = vst [vmem:[#allocation39_spill] sm:$0xff] %v4099_v21  ;;  %4588 = vst [vmem:[#allocation41_spill] sm:$0xff] %v4107_v6  ;;  %v4111_v29 = vmul.f32 0.25, %v4589_v15  ;;  %v4597_v1 = vld [vmem:[#allocation13_spill] sm:$0xff]  ;;  %v2729_v15 = vpop.eup %2728  ;;  %v4600_v17 = vld [vmem:[#allocation14_spill] sm:$0xff]  ;;  %v4604_v26 = vmax.f32 %v4603_v0, 0.0 }
 0x429   :  { %4586 = vst [vmem:[#allocation40_spill] sm:$0xff] %v4103_v58  ;;  %v4115_v21 = vmul.f32 0.25, %v4592_v44  ;;  %v4594_v58 = vld [vmem:[#allocation12_spill] sm:$0xff]  ;;  %v4598_v54 = vmax.f32 %v4597_v1, 0.0  ;;  %v1562_v44 = vadd.f32 1e-09, %v1530_v2  ;;  %2738 = vrsqrt.f32 %v1563_v23 }
 0x42a   :  { %4590 = vst [vmem:[#allocation42_spill] sm:$0xff] %v4111_v29  ;;  %v4595_v34 = vmax.f32 %v4594_v58, 0.0  ;;  %v1621_v29 = vmul.f32 %v2727_v43, %v3844_v53  ;;  %v4601_v25 = vmax.f32 %v4600_v17, 0.0  ;;  %v4137_v36 = vmul.f32 0.25, %v4604_v26  ;;  %v1454_v53 = vpop.xlane.xlu0 %1453  ;;  %v4606_v2 = vld [vmem:[#allocation16_spill] sm:$0xff]  ;;  %v4609_v26 = vld [vmem:[#allocation17_spill] sm:$0xff]  ;;  %v2731_v17 = vpop.eup %2730 }
 0x42b   :  { %4593 = vst [vmem:[#allocation43_spill] sm:$0xff] %v4115_v21  ;;  %v4128_v30 = vmul.f32 0.25, %v4598_v54  ;;  %v1457_v21 = vpop.xlane.xlu1 %1456  ;;  %v1620_v54 = vmul.f32 %v2729_v15, %v3847_v4  ;;  %v4607_v43 = vmax.f32 %v4606_v2, 0.0  ;;  %2740 = vrsqrt.f32 %v1562_v44  ;;  %v4612_v4 = vld [vmem:[#allocation18_spill] sm:$0xff]  ;;  %v4615_v15 = vld [vmem:[#allocation19_spill] sm:$0xff] }
 0x42c   :  { %v4124_v6 = vmul.f32 0.25, %v4595_v34  ;;  %v4133_v22 = vmul.f32 0.25, %v4601_v25  ;;  %4605 = vst [vmem:[#allocation47_spill] sm:$0xff] %v4137_v36  ;;  %v4142_v34 = vld [vmem:[%s4457_s4 + $0x6] ss:$0 sm:$0xff]  ;;  %v1658_v25 = vmul.f32 %v4120_v63, %v1621_v29  ;;  %v4610_v36 = vmax.f32 %v4609_v26, 0.0 }
 0x42d   :  { %4599 = vst [vmem:[#allocation45_spill] sm:$0xff] %v4128_v30  ;;  %v1533_v30 = vmul.f32 0.03125, %v1457_v21  ;;  %v1657_v58 = vmul.f32 %v4120_v63, %v1620_v54  ;;  %v4613_v23 = vmax.f32 %v4612_v4, 0.0  ;;  %v4616_v2 = vmax.f32 %v4615_v15, 0.0 }
 0x42e   :  { %4596 = vst [vmem:[#allocation44_spill] sm:$0xff] %v4124_v6  ;;  %4602 = vst [vmem:[#allocation46_spill] sm:$0xff] %v4133_v22  ;;  %v4147_v6 = vmul.f32 0.25, %v4607_v43  ;;  %v1532_v22 = vmul.f32 0.03125, %v1454_v53  ;;  %v4152_v0 = vmul.f32 0.25, %v4610_v36  ;;  %v1695_v29 = vadd.f32 %v4142_v34, %v1658_v25 }
 0x42f   :  { %v1565_v1 = vadd.f32 1e-09, %v1533_v30  ;;  %v4157_v21 = vmul.f32 0.25, %v4613_v23  ;;  %v4161_v43 = vmul.f32 0.25, %v4616_v2  ;;  %v1623_v44 = vmul.f32 %v2731_v17, %v3854_v7  ;;  %v1463_v36 = vpop.xlane.xlu1 %1462 }
 0x430   :  { %4608 = vst [vmem:[#allocation48_spill] sm:$0xff] %v4147_v6  ;;  %4611 = vst [vmem:[#allocation49_spill] sm:$0xff] %v4152_v0  ;;  %v2733_v6 = vpop.eup %2732  ;;  %v1564_v53 = vadd.f32 1e-09, %v1532_v22  ;;  %v4618_v0 = vld [vmem:[#allocation20_spill] sm:$0xff]  ;;  %v1535_v23 = vmul.f32 0.03125, %v1463_v36  ;;  %v1694_v15 = vadd.f32 %v4142_v34, %v1657_v58  ;;  %v1727_v2 = vadd.f32 %v1695_v29, %v3395_v50 }
 0x431   :  { %4614 = vst [vmem:[#allocation18_spill] sm:$0xff] %v4157_v21  ;;  %4617 = vst [vmem:[#allocation50_spill] sm:$0xff] %v4161_v43  ;;  %v4619_v26 = vmax.f32 %v4618_v0, 0.0  ;;  %v1622_v54 = vmul.f32 %v2733_v6, %v3858_v28  ;;  %2742 = vrsqrt.f32 %v1565_v1  ;;  %v1460_v21 = vpop.xlane.xlu0 %1459  ;;  %v1660_v25 = vmul.f32 %v4120_v63, %v1623_v44  ;;  %v2735_v7 = vpop.eup %2734 }
 0x432   :  { %2744 = vrsqrt.f32 %v1564_v53  ;;  %v1534_v43 = vmul.f32 0.03125, %v1460_v21  ;;  %v1567_v22 = vadd.f32 1e-09, %v1535_v23  ;;  %v1726_v17 = vadd.f32 %v1694_v15, %v3388_v59  ;;  %v2737_v28 = vpop.eup %2736 }
 0x433   :  { %v4167_v30 = vmul.f32 0.25, %v4619_v26  ;;  %v1659_v26 = vmul.f32 %v4120_v63, %v1622_v54  ;;  %v1759_v1 = vmax.f32 %v1727_v2, 0.0  ;;  %v1625_v58 = vmul.f32 %v2735_v7, %v3866_v40  ;;  %v1469_v50 = vpop.xlane.xlu1 %1468  ;;  %v2739_v23 = vpop.eup %2738 }
 0x434   :  { %v1566_v36 = vadd.f32 1e-09, %v1534_v43  ;;  %v1697_v21 = vadd.f32 %v4142_v34, %v1660_v25  ;;  %v1624_v29 = vmul.f32 %v2737_v28, %v3870_v31  ;;  %2746 = vrsqrt.f32 %v1567_v22 }
 0x435   :  { %4620 = vst [vmem:[#allocation51_spill] sm:$0xff] %v4167_v30  ;;  %v4621_v30 = vld [vmem:[#allocation21_spill] sm:$0xff]  ;;  %v1537_v44 = vmul.f32 0.03125, %v1469_v50  ;;  %v1466_v53 = vpop.xlane.xlu0 %1465  ;;  %v1758_v59 = vmax.f32 %v1726_v17, 0.0  ;;  %v1791_v54 = vmul.f32 0.75, %v1759_v1  ;;  %v2741_v7 = vpop.eup %2740  ;;  %v1627_v25 = vmul.f32 %v2739_v23, %v3878_v9 }
 0x436   :  { %v4622_v0 = vmax.f32 %v4621_v30, 0.0  ;;  %2748 = vrsqrt.f32 %v1566_v36  ;;  %v1536_v15 = vmul.f32 0.03125, %v1466_v53  ;;  %v1729_v40 = vadd.f32 %v1697_v21, %v3414_v39 }
 0x437   :  { %v1790_v2 = vmul.f32 0.75, %v1758_v59  ;;  %v1661_v43 = vmul.f32 %v4120_v63, %v1624_v29  ;;  %v1475_v22 = vpop.xlane.xlu1 %1474  ;;  %v1855_v28 = vadd.f32 %v4047_v57, %v1791_v54  ;;  %v1626_v1 = vmul.f32 %v2741_v7, %v3882_v60 }
 0x438   :  { %v4177_v6 = vmul.f32 0.25, %v4622_v0  ;;  %v1696_v0 = vadd.f32 %v4142_v34, %v1659_v26  ;;  %v1568_v31 = vadd.f32 1e-09, %v1536_v15  ;;  %v1539_v26 = vmul.f32 0.03125, %v1475_v22 }
 0x439   :  { %v1472_v36 = vpop.xlane.xlu0 %1471  ;;  %v1854_v50 = vadd.f32 %v4043_v19, %v1790_v2  ;;  %v1761_v29 = vmax.f32 %v1729_v40, 0.0  ;;  %v1698_v9 = vadd.f32 %v4142_v34, %v1661_v43  ;;  %v1662_v57 = vmul.f32 %v4120_v63, %v1625_v58 }
 0x43a   :  { %4623 = vst [vmem:[#allocation21_spill] sm:$0xff] %v4177_v6  ;;  %v1569_v6 = vadd.f32 1e-09, %v1537_v44  ;;  %v1728_v17 = vadd.f32 %v1696_v0, %v3404_v24  ;;  %v1538_v39 = vmul.f32 0.03125, %v1472_v36  ;;  %v1571_v53 = vadd.f32 1e-09, %v1539_v26 }
 0x43b   :  { %v2743_v44 = vpop.eup %2742  ;;  %2589 = vmatprep.mubr.msk.f32.mxu0 %vm382_vm1, %v1854_v50  ;;  %v1663_v24 = vmul.f32 %v4120_v63, %v1626_v1  ;;  %v1481_v15 = vpop.xlane.xlu1 %1480  ;;  %v1793_v54 = vmul.f32 0.75, %v1761_v29  ;;  %v1730_v40 = vadd.f32 %v1698_v9, %v3422_v38  ;;  %v1664_v36 = vmul.f32 %v4120_v63, %v1627_v25 }
 0x43c   :  { %2750 = vrsqrt.f32 %v1569_v6  ;;  %v1760_v21 = vmax.f32 %v1728_v17, 0.0  ;;  %v2745_v60 = vpop.eup %2744  ;;  %v1629_v6 = vmul.f32 %v2743_v44, %v3890_v61  ;;  %v1570_v59 = vadd.f32 1e-09, %v1538_v39  ;;  %2590 = vmatmul.mubr.msk.f32.vlgmr.msra.gmra.mrb[16].mxu0 %vm382_vm1, %v1855_v28 }
 0x43d   :  { %2752 = vrsqrt.f32 %v1568_v31  ;;  %v1628_v0 = vmul.f32 %v2745_v60, %v3894_v5  ;;  %v1541_v23 = vmul.f32 0.03125, %v1481_v15  ;;  %v1478_v2 = vpop.xlane.xlu0 %1477  ;;  %v1857_v7 = vadd.f32 %v4055_v11, %v1793_v54 }
 0x43e   :  { %v1792_v19 = vmul.f32 0.75, %v1760_v21  ;;  %2754 = vrsqrt.f32 %v1571_v53  ;;  %v1540_v58 = vmul.f32 0.03125, %v1478_v2  ;;  %v2747_v61 = vpop.eup %2746  ;;  %v1762_v22 = vmax.f32 %v1730_v40, 0.0 }
 0x43f   :  { %2756 = vrsqrt.f32 %v1570_v59  ;;  %v1573_v31 = vadd.f32 1e-09, %v1541_v23  ;;  %v1699_v28 = vadd.f32 %v4142_v34, %v1662_v57  ;;  %v1700_v17 = vadd.f32 %v4142_v34, %v1663_v24  ;;  %v1487_v38 = vpop.xlane.xlu1 %1486 }
 0x440   :  { %v1856_v43 = vadd.f32 %v4051_v18, %v1792_v19  ;;  %v2749_v1 = vpop.eup %2748  ;;  %v4203_v5 = vmul.f32 %v2747_v61, %v3902_v42  ;;  %v1572_v26 = vadd.f32 1e-09, %v1540_v58  ;;  %v1665_v18 = vmul.f32 %v4120_v63, %v1628_v0 }
 0x441   :  { %v1630_v11 = vmul.f32 %v2749_v1, %v3906_v49  ;;  %2758 = vrsqrt.f32 %v1573_v31  ;;  %v1543_v50 = vmul.f32 0.03125, %v1487_v38  ;;  %v1484_v39 = vpop.xlane.xlu0 %1483  ;;  %v1794_v21 = vmul.f32 0.75, %v1762_v22 }
 0x442   :  { %2592 = vmatprep.mubr.msk.f32.mxu0 %vm382_vm1, %v1856_v43  ;;  %2760 = vrsqrt.f32 %v1572_v26  ;;  %v1542_v29 = vmul.f32 0.03125, %v1484_v39  ;;  %v1731_v42 = vadd.f32 %v1699_v28, %v3432_v16  ;;  %v1732_v44 = vadd.f32 %v1700_v17, %v3440_v13 }
 0x443   :  { %2593 = vmatmul.mubr.msk.f32.gmra.mrb[18].mxu0 %vm382_vm1, %v1857_v7  ;;  %v1575_v9 = vadd.f32 1e-09, %v1543_v50  ;;  %v1858_v25 = vadd.f32 %v4059_v20, %v1794_v21  ;;  %v1701_v57 = vadd.f32 %v4142_v34, %v1664_v36  ;;  %v1702_v49 = vadd.f32 %v4142_v34, %v1665_v18  ;;  %v1493_v15 = vpop.xlane.xlu1 %1492 }
 0x444   :  { %v1574_v59 = vadd.f32 1e-09, %v1542_v29  ;;  %v1763_v19 = vmax.f32 %v1731_v42, 0.0  ;;  %v1764_v54 = vmax.f32 %v1732_v44, 0.0  ;;  %v1545_v13 = vmul.f32 0.03125, %v1493_v15 }
 0x445   :  { %2762 = vrsqrt.f32 %v1575_v9  ;;  %2595 = vmatprep.mubr.msk.f32.mxu0 %vm382_vm1, %v1858_v25  ;;  %v1490_v0 = vpop.xlane.xlu0 %1489  ;;  %v1733_v20 = vadd.f32 %v1701_v57, %v3450_v37  ;;  %v1734_v7 = vadd.f32 %v1702_v49, %v3458_v32  ;;  %v1666_v61 = vmul.f32 %v4120_v63, %v1629_v6 }
 0x446   :  { %v2751_v53 = vpop.eup %2750  ;;  %2764 = vrsqrt.f32 %v1574_v59  ;;  %v1795_v23 = vmul.f32 0.75, %v1763_v19  ;;  %v1544_v2 = vmul.f32 0.03125, %v1490_v0  ;;  %v1796_v40 = vmul.f32 0.75, %v1764_v54 }
 0x447   :  { %v2753_v24 = vpop.eup %2752  ;;  %v4216_v60 = vmul.f32 %v2751_v53, %v3914_v47  ;;  %v1577_v47 = vadd.f32 1e-09, %v1545_v13  ;;  %v1765_v43 = vmax.f32 %v1733_v20, 0.0  ;;  %v1499_v17 = vpop.xlane.xlu1 %1498  ;;  %v1766_v6 = vmax.f32 %v1734_v7, 0.0 }
 0x448   :  { %v1632_v16 = vmul.f32 %v2753_v24, %v3918_v10  ;;  %v2755_v58 = vpop.eup %2754  ;;  %v1859_v22 = vadd.f32 %v4063_v14, %v1795_v23  ;;  %v1576_v28 = vadd.f32 1e-09, %v1544_v2  ;;  %v1860_v37 = vadd.f32 %v4067_v46, %v1796_v40 }
 0x449   :  { %v2757_v31 = vpop.eup %2756  ;;  %v4224_v10 = vmul.f32 %v2755_v58, %v3926_v51  ;;  %2766 = vrsqrt.f32 %v1577_v47  ;;  %v1547_v26 = vmul.f32 0.03125, %v1499_v17  ;;  %v1797_v38 = vmul.f32 0.75, %v1765_v43  ;;  %v1496_v36 = vpop.xlane.xlu0 %1495 }
 0x44a   :  { %v4229_v1 = vmul.f32 %v2757_v31, %v3930_v45  ;;  %2596 = vmatmul.mubr.msk.f32.gmra.mrb[20].mxu0 %vm382_vm1, %v1859_v22  ;;  %2768 = vrsqrt.f32 %v1576_v28  ;;  %v1546_v32 = vmul.f32 0.03125, %v1496_v36  ;;  %v1703_v51 = vadd.f32 %v4142_v34, %v1666_v61 }
 0x44b   :  { %v2759_v18 = vpop.eup %2758  ;;  %2598 = vmatprep.mubr.msk.f32.mxu0 %vm382_vm1, %v1860_v37  ;;  %v1579_v14 = vadd.f32 1e-09, %v1547_v26  ;;  %v1861_v46 = vadd.f32 %v4071_v56, %v1797_v38  ;;  %v1667_v45 = vmul.f32 %v4120_v63, %v1630_v11  ;;  %v1668_v50 = vmul.f32 %v4120_v63, %v4203_v5  ;;  %v1505_v44 = vpop.xlane.xlu1 %1504  ;;  %v4624_v37 = vld [vmem:[#allocation35_spill] sm:$0xff]  ;;  %v4625_v26 = vld [vmem:[#allocation5_spill] sm:$0xff] }
 0x44c   :  { %v2761_v39 = vpop.eup %2760  ;;  %v4239_v21 = vmul.f32 %v2759_v18, %v3938_v35  ;;  %v1578_v29 = vadd.f32 1e-09, %v1546_v32  ;;  %v1798_v42 = vmul.f32 0.75, %v1766_v6  ;;  %v1735_v53 = vadd.f32 %v1703_v51, %v3468_v12  ;;  %v4626_v6 = vld [vmem:[#allocation6_spill] sm:$0xff] }
 0x44d   :  { %v4243_v9 = vmul.f32 %v2761_v39, %v3942_v55  ;;  %2770 = vrsqrt.f32 %v1579_v14  ;;  %v1549_v25 = vmul.f32 0.03125, %v1505_v44  ;;  %v1502_v56 = vpop.xlane.xlu0 %1501  ;;  %v1704_v11 = vadd.f32 %v4142_v34, %v1667_v45 }
 0x44e   :  { %2599 = vmatmul.mubr.msk.f32.gmra.mrb[22].mxu0 %vm382_vm1, %v1861_v46  ;;  %2772 = vrsqrt.f32 %v1578_v29  ;;  %v1862_v5 = vadd.f32 %v4075_v48, %v1798_v42  ;;  %v1767_v35 = vmax.f32 %v1735_v53, 0.0  ;;  %v1548_v57 = vmul.f32 0.03125, %v1502_v56  ;;  %v4628_v29 = vld [vmem:[#allocation36_spill] sm:$0xff]  ;;  %v4629_v56 = vld [vmem:[#allocation26_spill] sm:$0xff] }
 0x44f   :  { %v2763_v49 = vpop.eup %2762  ;;  %v1581_v24 = vadd.f32 1e-09, %v1549_v25  ;;  %v1736_v59 = vadd.f32 %v1704_v11, %v3476_v52  ;;  %v1705_v12 = vadd.f32 %v4142_v34, %v1668_v50  ;;  %v1669_v55 = vmul.f32 %v4120_v63, %v1632_v16  ;;  %v1511_v0 = vpop.xlane.xlu1 %1510  ;;  %v4627_v50 = vld [vmem:[#allocation25_spill] sm:$0xff] }
 0x450   :  { %v2765_v15 = vpop.eup %2764  ;;  %v4252_v19 = vmul.f32 %v2763_v49, %v3950_v33  ;;  %2601 = vmatprep.mubr.msk.f32.mxu0 %vm382_vm1, %v1862_v5  ;;  %v1799_v54 = vmul.f32 0.75, %v1767_v35  ;;  %v1580_v13 = vadd.f32 1e-09, %v1548_v57  ;;  %v1670_v48 = vmul.f32 %v4120_v63, %v4216_v60  ;;  %v4630_v57 = vld [vmem:[#allocation7_spill] sm:$0xff] }
 0x451   :  { %v4258_v20 = vmul.f32 %v2765_v15, %v3954_v41  ;;  %2774 = vrsqrt.f32 %v1581_v24  ;;  %v1768_v52 = vmax.f32 %v1736_v59, 0.0  ;;  %v1551_v23 = vmul.f32 0.03125, %v1511_v0  ;;  %v1508_v2 = vpop.xlane.xlu0 %1507  ;;  %v4631_v15 = vld [vmem:[#allocation37_spill] sm:$0xff] }
 0x452   :  { %v1863_v16 = vadd.f32 %v4079_v3, %v1799_v54  ;;  %2776 = vrsqrt.f32 %v1580_v13  ;;  %v1737_v33 = vadd.f32 %v1705_v12, %v3486_v8  ;;  %v1550_v40 = vmul.f32 0.03125, %v1508_v2  ;;  %v4633_v2 = vld [vmem:[#allocation38_spill] sm:$0xff] }
 0x453   :  { %v2767_v58 = vpop.eup %2766  ;;  %v1800_v47 = vmul.f32 0.75, %v1768_v52  ;;  %v1583_v43 = vadd.f32 1e-09, %v1551_v23  ;;  %v1706_v7 = vadd.f32 %v4142_v34, %v1669_v55  ;;  %v1707_v60 = vadd.f32 %v4142_v34, %v1670_v48  ;;  %v1517_v3 = vpop.xlane.xlu1 %1516  ;;  %v4632_v52 = vld [vmem:[#allocation27_spill] sm:$0xff] }
 0x454   :  { %v2769_v61 = vpop.eup %2768  ;;  %v4265_v41 = vmul.f32 %v2767_v58, %v3962_v62  ;;  %2602 = vmatmul.mubr.msk.f32.gmra.mrb[24].mxu0 %vm382_vm1, %v1863_v16  ;;  %v1769_v31 = vmax.f32 %v1737_v33, 0.0  ;;  %v1582_v22 = vadd.f32 1e-09, %v1550_v40  ;;  %v1671_v8 = vmul.f32 %v4120_v63, %v4229_v1  ;;  %v4634_v40 = vld [vmem:[#allocation8_spill] sm:$0xff] }
 0x455   :  { %v4271_v28 = vmul.f32 %v2769_v61, %v3966_v27  ;;  %v1864_v17 = vadd.f32 %v4624_v37, %v1800_v47  ;;  %2778 = vrsqrt.f32 %v1583_v43  ;;  %v1738_v38 = vadd.f32 %v1706_v7, %v4625_v26  ;;  %v1514_v36 = vpop.xlane.xlu0 %1513  ;;  %v4635_v47 = vld [vmem:[#allocation28_spill] sm:$0xff]  ;;  %v4636_v37 = vld [vmem:[#allocation39_spill] sm:$0xff] }
 0x456   :  { %v1801_v32 = vmul.f32 0.75, %v1769_v31  ;;  %2780 = vrsqrt.f32 %v1582_v22  ;;  %v1553_v62 = vmul.f32 0.03125, %v1517_v3  ;;  %v1739_v51 = vadd.f32 %v1707_v60, %v4626_v6 }
 0x457   :  { %v2771_v18 = vpop.eup %2770  ;;  %2604 = vmatprep.mubr.msk.f32.mxu0 %vm382_vm1, %v1864_v17  ;;  %v1770_v14 = vmax.f32 %v1738_v38, 0.0  ;;  %v1552_v46 = vmul.f32 0.03125, %v1514_v36  ;;  %v1708_v1 = vadd.f32 %v4142_v34, %v1671_v8  ;;  %v1672_v27 = vmul.f32 %v4120_v63, %v4224_v10  ;;  %v1523_v25 = vpop.xlane.xlu1 %1522  ;;  %v4637_v36 = vld [vmem:[#allocation29_spill] sm:$0xff] }
 0x458   :  { %v2773_v45 = vpop.eup %2772  ;;  %v4281_v39 = vmul.f32 %v2771_v18, %v4627_v50  ;;  %v1865_v42 = vadd.f32 %v4628_v29, %v1801_v32  ;;  %v1585_v44 = vadd.f32 1e-09, %v1553_v62  ;;  %v1771_v53 = vmax.f32 %v1739_v51, 0.0  ;;  %v4638_v51 = vld [vmem:[#allocation30_spill] sm:$0xff]  ;;  %v4639_v18 = vld [vmem:[#allocation9_spill] sm:$0xff]  ;;  %v4642_v29 = vld [vmem:[#allocation11_spill] sm:$0xff] }
 0x459   :  { %v1642_v11 = vmul.f32 %v2773_v45, %v4629_v56  ;;  %v1802_v5 = vmul.f32 0.75, %v1770_v14  ;;  %v1584_v35 = vadd.f32 1e-09, %v1552_v46  ;;  %v1740_v49 = vadd.f32 %v1708_v1, %v4630_v57  ;;  %v1520_v24 = vpop.xlane.xlu0 %1519  ;;  %v4640_v1 = vld [vmem:[#allocation40_spill] sm:$0xff]  ;;  %v4641_v45 = vld [vmem:[#allocation10_spill] sm:$0xff] }
 0x45a   :  { %2605 = vmatmul.mubr.msk.f32.gmra.mrb[26].mxu0 %vm382_vm1, %v1865_v42  ;;  %2782 = vrsqrt.f32 %v1585_v44  ;;  %v1803_v10 = vmul.f32 0.75, %v1771_v53  ;;  %v1555_v59 = vmul.f32 0.03125, %v1523_v25  ;;  %v1709_v12 = vadd.f32 %v4142_v34, %v1672_v27  ;;  %v4643_v25 = vld [vmem:[#allocation12_spill] sm:$0xff] }
 0x45b   :  { %v2775_v55 = vpop.eup %2774  ;;  %v1866_v54 = vadd.f32 %v4631_v15, %v1802_v5  ;;  %2784 = vrsqrt.f32 %v1584_v35  ;;  %v1772_v13 = vmax.f32 %v1740_v49, 0.0  ;;  %v1554_v0 = vmul.f32 0.03125, %v1520_v24 }
 0x45c   :  { %v2777_v48 = vpop.eup %2776  ;;  %v4290_v23 = vmul.f32 %v2775_v55, %v4632_v52  ;;  %v1867_v16 = vadd.f32 %v4633_v2, %v1803_v10  ;;  %v1587_v33 = vadd.f32 1e-09, %v1555_v59  ;;  %v1741_v58 = vadd.f32 %v1709_v12, %v4634_v40  ;;  %v4644_v12 = vld [vmem:[#allocation31_spill] sm:$0xff]  ;;  %v4647_v2 = vld [vmem:[#allocation14_spill] sm:$0xff] }
 0x45d   :  { %v4295_v43 = vmul.f32 %v2777_v48, %v4635_v47  ;;  %2607 = vmatprep.mubr.msk.f32.mxu0 %vm382_vm1, %v1866_v54  ;;  %v1804_v7 = vmul.f32 0.75, %v1772_v13  ;;  %v1586_v60 = vadd.f32 1e-09, %v1554_v0  ;;  %v1673_v61 = vmul.f32 %v4120_v63, %v4243_v9  ;;  %v4645_v54 = vld [vmem:[#allocation13_spill] sm:$0xff]  ;;  %v4646_v0 = vld [vmem:[#allocation32_spill] sm:$0xff] }
 0x45e   :  { %2608 = vmatmul.mubr.msk.f32.gmra.mrb[28].mxu0 %vm382_vm1, %v1867_v16  ;;  %2786 = vrsqrt.f32 %v1587_v33  ;;  %v1773_v31 = vmax.f32 %v1741_v58, 0.0  ;;  %v1674_v22 = vmul.f32 %v4120_v63, %v4239_v21  ;;  %v1675_v3 = vmul.f32 %v4120_v63, %v4258_v20  ;;  %v4648_v33 = vld [vmem:[#allocation41_spill] sm:$0xff] }
 0x45f   :  { %v2779_v8 = vpop.eup %2778  ;;  %v1868_v17 = vadd.f32 %v4636_v37, %v1804_v7  ;;  %2788 = vrsqrt.f32 %v1586_v60  ;;  %v1710_v26 = vadd.f32 %v4142_v34, %v1673_v61  ;;  %v1676_v38 = vmul.f32 %v4120_v63, %v4252_v19  ;;  %v4649_v60 = vld [vmem:[#allocation42_spill] sm:$0xff] }
 0x460   :  { %v2781_v9 = vpop.eup %2780  ;;  %v4310_v32 = vmul.f32 %v2779_v8, %v4637_v36  ;;  %v1805_v62 = vmul.f32 0.75, %v1773_v31  ;;  %v1711_v6 = vadd.f32 %v4142_v34, %v1674_v22  ;;  %v1712_v21 = vadd.f32 %v4142_v34, %v1675_v3  ;;  %v4650_v31 = vld [vmem:[#allocation43_spill] sm:$0xff] }
 0x461   :  { %v1646_v20 = vmul.f32 %v2781_v9, %v4638_v51  ;;  %2610 = vmatprep.mubr.msk.f32.mxu0 %vm382_vm1, %v1868_v17  ;;  %v1742_v14 = vadd.f32 %v1710_v26, %v4639_v18  ;;  %v1713_v46 = vadd.f32 %v4142_v34, %v1676_v38  ;;  %v1677_v19 = vmul.f32 %v4120_v63, %v4271_v28  ;;  %v4651_v17 = vld [vmem:[#allocation33_spill] sm:$0xff]  ;;  %v4652_v38 = vld [vmem:[#allocation44_spill] sm:$0xff] }
 0x462   :  { %v1869_v27 = vadd.f32 %v4640_v1, %v1805_v62  ;;  %v1743_v50 = vadd.f32 %v1711_v6, %v4641_v45  ;;  %v1744_v42 = vadd.f32 %v1712_v21, %v4642_v29  ;;  %v1678_v44 = vmul.f32 %v4120_v63, %v4265_v41  ;;  %v4653_v62 = vld [vmem:[#allocation15_spill] sm:$0xff]  ;;  %v4654_v21 = vld [vmem:[#allocation34_spill] sm:$0xff] }
 0x463   :  { %v1774_v53 = vmax.f32 %v1742_v14, 0.0  ;;  %v1745_v56 = vadd.f32 %v1713_v46, %v4643_v25  ;;  %v1714_v5 = vadd.f32 %v4142_v34, %v1677_v19  ;;  %v1679_v35 = vmul.f32 %v4120_v63, %v1642_v11  ;;  %v4655_v14 = vld [vmem:[#allocation16_spill] sm:$0xff] }
 0x464   :  { %v2783_v57 = vpop.eup %2782  ;;  %2611 = vmatmul.mubr.msk.f32.gmra.mrb[30].mxu0 %vm382_vm1, %v1869_v27  ;;  %v1775_v28 = vmax.f32 %v1743_v50, 0.0  ;;  %v1776_v49 = vmax.f32 %v1744_v42, 0.0  ;;  %v1715_v24 = vadd.f32 %v4142_v34, %v1678_v44  ;;  %v1680_v10 = vmul.f32 %v4120_v63, %v4281_v39  ;;  %v4656_v27 = vld [vmem:[#allocation45_spill] sm:$0xff]  ;;  %v4657_v44 = vld [vmem:[#allocation46_spill] sm:$0xff] }
 0x465   :  { %v2785_v59 = vpop.eup %2784  ;;  %v1649_v41 = vmul.f32 %v2783_v57, %v4644_v12  ;;  %v1806_v55 = vmul.f32 0.75, %v1774_v53  ;;  %v1777_v15 = vmax.f32 %v1745_v56, 0.0  ;;  %v1746_v13 = vadd.f32 %v1714_v5, %v4645_v54 }
 0x466   :  { %v1648_v48 = vmul.f32 %v2785_v59, %v4646_v0  ;;  %v1807_v11 = vmul.f32 0.75, %v1775_v28  ;;  %v1808_v52 = vmul.f32 0.75, %v1776_v49  ;;  %v1747_v16 = vadd.f32 %v1715_v24, %v4647_v2  ;;  %v4658_v49 = vld [vmem:[#allocation17_spill] sm:$0xff]  ;;  %v4659_v59 = vld [vmem:[#allocation47_spill] sm:$0xff] }
 0x467   :  { %v1870_v40 = vadd.f32 %v4648_v33, %v1806_v55  ;;  %v1809_v58 = vmul.f32 0.75, %v1777_v15  ;;  %v1778_v47 = vmax.f32 %v1746_v13, 0.0  ;;  %v1716_v7 = vadd.f32 %v4142_v34, %v1679_v35 }
 0x468   :  { %v2787_v39 = vpop.eup %2786  ;;  %v1871_v61 = vadd.f32 %v4649_v60, %v1807_v11  ;;  %v1872_v22 = vadd.f32 %v4650_v31, %v1808_v52  ;;  %v1779_v3 = vmax.f32 %v1747_v16, 0.0  ;;  %v1717_v8 = vadd.f32 %v4142_v34, %v1680_v10  ;;  %v4661_v52 = vld [vmem:[#allocation19_spill] sm:$0xff] }
 0x469   :  { %v2789_v37 = vpop.eup %2788  ;;  %v1651_v26 = vmul.f32 %v2787_v39, %v4651_v17  ;;  %2613 = vmatprep.mubr.msk.f32.mxu0 %vm382_vm1, %v1870_v40  ;;  %v1873_v9 = vadd.f32 %v4652_v38, %v1809_v58  ;;  %v1810_v36 = vmul.f32 0.75, %v1778_v47  ;;  %v1748_v6 = vadd.f32 %v1716_v7, %v4653_v62  ;;  %v4663_v40 = vld [vmem:[#allocation22_spill] sm:$0xff]  ;;  %v4666_v17 = vld [vmem:[#allocation24_spill] sm:$0xff] }
 0x46a   :  { %v1650_v51 = vmul.f32 %v2789_v37, %v4654_v21  ;;  %2614 = vmatmul.mubr.msk.f32.gmra.mrb[32].mxu0 %vm382_vm1, %v1871_v61  ;;  %v1811_v18 = vmul.f32 0.75, %v1779_v3  ;;  %v1749_v46 = vadd.f32 %v1717_v8, %v4655_v14  ;;  %v1681_v19 = vmul.f32 %v4120_v63, %v4295_v43  ;;  %v4664_v61 = vld [vmem:[#allocation23_spill] sm:$0xff]  ;;  %v4669_v14 = vld [vmem:[#allocation50_spill] sm:$0xff] }
 0x46b   :  { %v1688_v1 = vmul.f32 %v4120_v63, %v1651_v26  ;;  %2616 = vmatprep.mubr.msk.f32.mxu0 %vm382_vm1, %v1872_v22  ;;  %v1874_v45 = vadd.f32 %v4656_v27, %v1810_v36  ;;  %v1780_v50 = vmax.f32 %v1748_v6, 0.0  ;;  %v1682_v29 = vmul.f32 %v4120_v63, %v4290_v23  ;;  %v4665_v22 = vld [vmem:[#allocation49_spill] sm:$0xff] }
 0x46c   :  { %v1687_v42 = vmul.f32 %v4120_v63, %v1650_v51  ;;  %v1875_v53 = vadd.f32 %v4657_v44, %v1811_v18  ;;  %v1781_v25 = vmax.f32 %v1749_v46, 0.0  ;;  %v1718_v56 = vadd.f32 %v4142_v34, %v1681_v19  ;;  %v4670_v19 = vld [vmem:[#allocation51_spill] sm:$0xff]  ;;  %v4673_v44 = vld [vmem:[#allocation21_spill] sm:$0xff] }
 0x46d   :  { %v1812_v5 = vmul.f32 0.75, %v1780_v50  ;;  %v1719_v43 = vadd.f32 %v4142_v34, %v1682_v29  ;;  %v1683_v35 = vmul.f32 %v4120_v63, %v1646_v20  ;;  %v1684_v57 = vmul.f32 %v4120_v63, %v4310_v32  ;;  %v4660_v32 = vld [vmem:[#allocation48_spill] sm:$0xff]  ;;  %v4672_v29 = vld [vmem:[#allocation18_spill] sm:$0xff] }
 0x46e   :  { %2617 = vmatmul.mubr.msk.f32.gmra.mrb[34].mxu0 %vm382_vm1, %v1873_v9  ;;  %v1813_v28 = vmul.f32 0.75, %v1781_v25  ;;  %v1750_v23 = vadd.f32 %v1718_v56, %v4658_v49  ;;  %v1685_v24 = vmul.f32 %v4120_v63, %v1648_v48  ;;  %v1686_v10 = vmul.f32 %v4120_v63, %v1649_v41  ;;  %v4662_v41 = vld [vmem:[#allocation20_spill] sm:$0xff] }
 0x46f   :  { %2619 = vmatprep.mubr.msk.f32.mxu0 %vm382_vm1, %v1874_v45  ;;  %v1876_v12 = vadd.f32 %v4659_v59, %v1812_v5  ;;  %v1751_v55 = vadd.f32 %v1719_v43, %v4612_v4  ;;  %v1720_v20 = vadd.f32 %v4142_v34, %v1683_v35  ;;  %v1721_v15 = vadd.f32 %v4142_v34, %v1684_v57  ;;  %v4407_v35 = vld [vmem:[%s4457_s4 + $0x2] ss:$0 sm:$0xff]  ;;  %s2814_s4 = smov [#allocation2]  }
 0x470   :  { %v1877_v54 = vadd.f32 %v4660_v32, %v1813_v28  ;;  %v1782_v13 = vmax.f32 %v1750_v23, 0.0  ;;  %v1722_v0 = vadd.f32 %v4142_v34, %v1685_v24  ;;  %v1723_v11 = vadd.f32 %v4142_v34, %v1686_v10  ;;  %s2253_s9 = sshll.u32 %s2814_s4, 4  ;;  %s2254_s9 = int_to_ptr.vmem [resolvable:$true] %s2253_s9 }
 0x471   :  { %v1783_v48 = vmax.f32 %v1751_v55, 0.0  ;;  %v1752_v63 = vadd.f32 %v1720_v20, %v4661_v52  ;;  %v1753_v2 = vadd.f32 %v1721_v15, %v4662_v41  ;;  %v1724_v16 = vadd.f32 %v4142_v34, %v1687_v42  ;;  %s2790_s0 = scalar_lea.vmem %s2254_s9, 4096  ;;  %p2795_p1 = scmp.lt.s32.totalorder %s2254_s9, %s2254_s9 }
 0x472   :  { %2620 = vmatmul.mubr.msk.f32.gmra.mrb[36].mxu0 %vm382_vm1, %v1875_v53  ;;  %v1814_v4 = vmul.f32 0.75, %v1782_v13  ;;  %v1754_v33 = vadd.f32 %v1722_v0, %v4621_v30  ;;  %v1755_v58 = vadd.f32 %v1723_v11, %v4663_v40  ;;  %v1725_v47 = vadd.f32 %v4142_v34, %v1688_v1  ;;  %p2791_p0 = scmp.ne.s32.totalorder %s2254_s9, %s2790_s0  ;;  %p2796_p2 = scmp.lt.s32.totalorder %s2790_s0, %s2790_s0 }
 0x473   :  { %2622 = vmatprep.mubr.msk.f32.mxu0 %vm382_vm1, %v1876_v12  ;;  %v1815_v7 = vmul.f32 0.75, %v1783_v48  ;;  %v1784_v39 = vmax.f32 %v1752_v63, 0.0  ;;  %v1785_v60 = vmax.f32 %v1753_v2, 0.0  ;;  %v1756_v31 = vadd.f32 %v1724_v16, %v4664_v61 }
 0x474   :  { %v1878_v3 = vadd.f32 %v4665_v22, %v1814_v4  ;;  %v1786_v8 = vmax.f32 %v1754_v33, 0.0  ;;  %v1787_v37 = vmax.f32 %v1755_v58, 0.0  ;;  %v1757_v26 = vadd.f32 %v1725_v47, %v4666_v17  ;;  %p2797_p3 = por %p2796_p2, %p2795_p1 }
 0x475   :  { %v1816_v38 = vmul.f32 0.75, %v1784_v39  ;;  %v1817_v9 = vmul.f32 0.75, %v1785_v60  ;;  %v4667_v30 = vmax.f32 %v4663_v40, 0.0  ;;  %v1788_v62 = vmax.f32 %v1756_v31, 0.0 }
 0x476   :  { %2623 = vmatmul.mubr.msk.f32.gmra.mrb[38].mxu0 %vm382_vm1, %v1877_v54  ;;  %v1818_v34 = vmul.f32 0.75, %v1786_v8  ;;  %v1819_v6 = vmul.f32 0.75, %v1787_v37  ;;  %v4668_v21 = vmax.f32 %v4664_v61, 0.0  ;;  %v1789_v18 = vmax.f32 %v1757_v26, 0.0  ;;  %p2798_p4 = pnand %p2797_p3, %p2791_p0 }
 0x477   :  { %v1851_v36 = vmul.f32 0.25, %v4667_v30  ;;  %2625 = vmatprep.mubr.msk.f32.mxu0 %vm382_vm1, %v1878_v3  ;;  %v1880_v46 = vadd.f32 %v4669_v14, %v1816_v38  ;;  %v1881_v1 = vadd.f32 %v4670_v19, %v1817_v9  ;;  %v1820_v27 = vmul.f32 0.75, %v1788_v62 }
 0x478   :  { %v1852_v51 = vmul.f32 0.25, %v4668_v21  ;;  %v4671_v45 = vmax.f32 %v4666_v17, 0.0  ;;  %v1879_v42 = vadd.f32 %v4672_v29, %v1815_v7  ;;  %v1882_v53 = vadd.f32 %v4673_v44, %v1818_v34 }
 0x479   :  { %v1883_v25 = vadd.f32 %v1851_v36, %v1819_v6  ;;  %v1821_v56 = vmul.f32 0.75, %v1789_v18 }
 0x47a   :  { %v1853_v50 = vmul.f32 0.25, %v4671_v45  ;;  %v1884_v5 = vadd.f32 %v1852_v51, %v1820_v27  ;;  %2626 = vmatmul.mubr.msk.f32.gmra.mrb[40].mxu0 %vm382_vm1, %v1879_v42 }
 0x47b   :  { %2628 = vmatprep.mubr.msk.f32.mxu0 %vm382_vm1, %v1880_v46 }
 0x47c   :  { %v1885_v43 = vadd.f32 %v1853_v50, %v1821_v56 }
 0x47e   :  { %2629 = vmatmul.mubr.msk.f32.gmra.mrb[42].mxu0 %vm382_vm1, %v1881_v1 }
 0x47f   :  { %2631 = vmatprep.mubr.msk.f32.mxu0 %vm382_vm1, %v1882_v53 }
 0x482   :  { %2632 = vmatmul.mubr.msk.f32.gmra.mrb[44].mxu0 %vm382_vm1, %v1883_v25 }
 0x483   :  { %2634 = vmatprep.mubr.msk.f32.mxu0 %vm382_vm1, %v1884_v5 }
 0x486   :  { %2635 = vmatmul.mubr.msk.f32.gmra.mrb[46].mxu0 %vm382_vm1, %v1885_v43 }
 0x50f   :  { %v2591_v57 = vpop.f32.mrb[16].mxu0 }
 0x510   :  { %v2063_v28 = vadd.f32 %v2591_v57, %v4407_v35  ;;  %v2057_v49 = vpop.f32.mrb[17].mxu0 }
 0x511   :  { %v2058_v23 = vadd.f32 %v4407_v35, %v2057_v49 }
 0x512   :  { %2217 = vst [vmem:[#allocation2 + $0x8] sm:$0xff] %v2063_v28 }
 0x513   :  { %2216 = vst [vmem:[#allocation2] sm:$0xff] %v2058_v23 }
 0x516   :  { %v2594_v24 = vpop.f32.mrb[18].mxu0 }
 0x517   :  { %v2073_v10 = vadd.f32 %v2594_v24, %v4407_v35  ;;  %v2067_v59 = vpop.f32.mrb[19].mxu0 }
 0x518   :  { %v2068_v12 = vadd.f32 %v4407_v35, %v2067_v59 }
 0x519   :  { %2219 = vst [vmem:[#allocation2 + $0x18] sm:$0xff] %v2073_v10 }
 0x51a   :  { %2218 = vst [vmem:[#allocation2 + $0x10] sm:$0xff] %v2068_v12 }
 0x51d   :  { %v2597_v55 = vpop.f32.mrb[20].mxu0 }
 0x51e   :  { %v2083_v20 = vadd.f32 %v2597_v55, %v4407_v35  ;;  %v2077_v15 = vpop.f32.mrb[21].mxu0 }
 0x51f   :  { %v2078_v32 = vadd.f32 %v4407_v35, %v2077_v15 }
 0x520   :  { %2221 = vst [vmem:[#allocation2 + $0x28] sm:$0xff] %v2083_v20 }
 0x521   :  { %2220 = vst [vmem:[#allocation2 + $0x20] sm:$0xff] %v2078_v32  ;;  %v2600_v54 = vpop.f32.mrb[22].mxu0 }
 0x522   :  { %v2093_v13 = vadd.f32 %v2600_v54, %v4407_v35  ;;  %v2087_v0 = vpop.f32.mrb[23].mxu0 }
 0x523   :  { %v2088_v11 = vadd.f32 %v4407_v35, %v2087_v0 }
 0x524   :  { %2223 = vst [vmem:[#allocation2 + $0x38] sm:$0xff] %v2093_v13 }
 0x525   :  { %2222 = vst [vmem:[#allocation2 + $0x30] sm:$0xff] %v2088_v11 }
 0x527   :  { %v2603_v48 = vpop.f32.mrb[24].mxu0 }
 0x528   :  { %v2103_v52 = vadd.f32 %v2603_v48, %v4407_v35  ;;  %v2097_v63 = vpop.f32.mrb[25].mxu0 }
 0x529   :  { %v2098_v41 = vadd.f32 %v4407_v35, %v2097_v63 }
 0x52a   :  { %2225 = vst [vmem:[#allocation2 + $0x48] sm:$0xff] %v2103_v52 }
 0x52b   :  { %2224 = vst [vmem:[#allocation2 + $0x40] sm:$0xff] %v2098_v41 }
 0x52d   :  { %v2606_v2 = vpop.f32.mrb[26].mxu0 }
 0x52e   :  { %v2113_v16 = vadd.f32 %v2606_v2, %v4407_v35  ;;  %v2107_v4 = vpop.f32.mrb[27].mxu0 }
 0x52f   :  { %v2108_v33 = vadd.f32 %v4407_v35, %v2107_v4 }
 0x530   :  { %2227 = vst [vmem:[#allocation2 + $0x58] sm:$0xff] %v2113_v16 }
 0x531   :  { %2226 = vst [vmem:[#allocation2 + $0x50] sm:$0xff] %v2108_v33  ;;  %v2609_v40 = vpop.f32.mrb[28].mxu0 }
 0x532   :  { %v2123_v58 = vadd.f32 %v2609_v40, %v4407_v35  ;;  %v2117_v47 = vpop.f32.mrb[29].mxu0 }
 0x533   :  { %v2118_v7 = vadd.f32 %v4407_v35, %v2117_v47 }
 0x534   :  { %2229 = vst [vmem:[#allocation2 + $0x68] sm:$0xff] %v2123_v58 }
 0x535   :  { %2228 = vst [vmem:[#allocation2 + $0x60] sm:$0xff] %v2118_v7 }
 0x537   :  { %v2612_v39 = vpop.f32.mrb[30].mxu0 }
 0x538   :  { %v2133_v60 = vadd.f32 %v2612_v39, %v4407_v35  ;;  %v2127_v61 = vpop.f32.mrb[31].mxu0 }
 0x539   :  { %v2128_v31 = vadd.f32 %v4407_v35, %v2127_v61 }
 0x53a   :  { %2231 = vst [vmem:[#allocation2 + $0x78] sm:$0xff] %v2133_v60 }
 0x53b   :  { %2230 = vst [vmem:[#allocation2 + $0x70] sm:$0xff] %v2128_v31 }
 0x53d   :  { %v2615_v22 = vpop.f32.mrb[32].mxu0 }
 0x53e   :  { %v2143_v3 = vadd.f32 %v2615_v22, %v4407_v35  ;;  %v2137_v8 = vpop.f32.mrb[33].mxu0 }
 0x53f   :  { %v2138_v37 = vadd.f32 %v4407_v35, %v2137_v8 }
 0x540   :  { %2233 = vst [vmem:[#allocation2 + $0x88] sm:$0xff] %v2143_v3 }
 0x541   :  { %2232 = vst [vmem:[#allocation2 + $0x80] sm:$0xff] %v2138_v37  ;;  %v2618_v17 = vpop.f32.mrb[34].mxu0 }
 0x542   :  { %v2153_v26 = vadd.f32 %v2618_v17, %v4407_v35  ;;  %v2147_v38 = vpop.f32.mrb[35].mxu0 }
 0x543   :  { %v2148_v9 = vadd.f32 %v4407_v35, %v2147_v38 }
 0x544   :  { %2235 = vst [vmem:[#allocation2 + $0x98] sm:$0xff] %v2153_v26 }
 0x545   :  { %2234 = vst [vmem:[#allocation2 + $0x90] sm:$0xff] %v2148_v9  ;;  %v2621_v30 = vpop.f32.mrb[36].mxu0 }
 0x546   :  { %v2163_v36 = vadd.f32 %v2621_v30, %v4407_v35  ;;  %v2157_v62 = vpop.f32.mrb[37].mxu0 }
 0x547   :  { %v2158_v34 = vadd.f32 %v4407_v35, %v2157_v62 }
 0x548   :  { %2237 = vst [vmem:[#allocation2 + $0xa8] sm:$0xff] %v2163_v36 }
 0x549   :  { %2236 = vst [vmem:[#allocation2 + $0xa0] sm:$0xff] %v2158_v34  ;;  %v2624_v6 = vpop.f32.mrb[38].mxu0 }
 0x54a   :  { %v2173_v21 = vadd.f32 %v2624_v6, %v4407_v35  ;;  %v2167_v51 = vpop.f32.mrb[39].mxu0 }
 0x54b   :  { %v2168_v18 = vadd.f32 %v4407_v35, %v2167_v51 }
 0x54c   :  { %2239 = vst [vmem:[#allocation2 + $0xb8] sm:$0xff] %v2173_v21 }
 0x54d   :  { %2238 = vst [vmem:[#allocation2 + $0xb0] sm:$0xff] %v2168_v18  ;;  %v2627_v14 = vpop.f32.mrb[40].mxu0 }
 0x54e   :  { %v2183_v46 = vadd.f32 %v2627_v14, %v4407_v35  ;;  %v2177_v19 = vpop.f32.mrb[41].mxu0 }
 0x54f   :  { %v2178_v1 = vadd.f32 %v4407_v35, %v2177_v19 }
 0x550   :  { %2241 = vst [vmem:[#allocation2 + $0xc8] sm:$0xff] %v2183_v46 }
 0x551   :  { %2240 = vst [vmem:[#allocation2 + $0xc0] sm:$0xff] %v2178_v1  ;;  %v2630_v27 = vpop.f32.mrb[42].mxu0 }
 0x552   :  { %v2193_v45 = vadd.f32 %v2630_v27, %v4407_v35  ;;  %v2187_v50 = vpop.f32.mrb[43].mxu0 }
 0x553   :  { %v2188_v29 = vadd.f32 %v4407_v35, %v2187_v50 }
 0x554   :  { %2243 = vst [vmem:[#allocation2 + $0xd8] sm:$0xff] %v2193_v45 }
 0x555   :  { %2242 = vst [vmem:[#allocation2 + $0xd0] sm:$0xff] %v2188_v29  ;;  %v2633_v42 = vpop.f32.mrb[44].mxu0 }
 0x556   :  { %v2203_v44 = vadd.f32 %v2633_v42, %v4407_v35  ;;  %v2197_v53 = vpop.f32.mrb[45].mxu0 }
 0x557   :  { %v2198_v25 = vadd.f32 %v4407_v35, %v2197_v53 }
 0x558   :  { %2245 = vst [vmem:[#allocation2 + $0xe8] sm:$0xff] %v2203_v44 }
 0x559   :  { %2244 = vst [vmem:[#allocation2 + $0xe0] sm:$0xff] %v2198_v25  ;;  %v2636_v56 = vpop.f32.mrb[46].mxu0 }
 0x55a   :  { %v2213_v5 = vadd.f32 %v2636_v56, %v4407_v35  ;;  %v2207_v43 = vpop.f32.mrb[47].mxu0 }
 0x55b   :  { %v2208_v57 = vadd.f32 %v4407_v35, %v2207_v43 }
 0x55c   :  { %2247 = vst [vmem:[#allocation2 + $0xf8] sm:$0xff] %v2213_v5 }
 0x55d   :  { %2246 = vst [vmem:[#allocation2 + $0xf0] sm:$0xff] %v2208_v57 }
 0x55e   :  { %2801 = shalt.err (!%p2798_p4)
}
 0x55f   :  { %s2802_s12 = scalar_lea.hbm %s4458_s5, 4096 }
 0x560   :  { %p2803_p5 = scmp.ne.s32.totalorder %s4458_s5, %s2802_s12  ;;  %p2806_p6 = scmp.lt.u32.totalorder %s2802_s12, %s4458_s5 }
 0x562   :  { %p2808_p7 = pnand %p2806_p6, %p2803_p5 }
 0x564   :  { %2811 = shalt.err (!%p2808_p7)
}
 0x565   :  { %s2815_s2 = smov 128   ;;  %s2816_s17 = smov 8  }
 0x566   :  { %2259 = dma.vmem_to_hbm [thread:$0]  %s2254_s9, 4096, %s4458_s5, [#allocation3], %s2815_s2, %s2815_s2, %s2816_s17  }
 0x567   :  { %2812 = dma.done.wait [#allocation3], 4096  }
 0x568   :  { %2813 = vsyncadd [#allocation3], 4294963200 }
 0x569   :  { %2263 = vsyncpa [#allocation3], 1 }

</bundles_post_ra>
